<compile_context>
chip_gen: v7x
topology: tpu7x:2x2x1
jax: 0.10.0
libtpu: 0.0.40
codegen_flags: <defaults>
</compile_context>

<pallas_src>
import jax
import jax.numpy as jnp
from jax import lax
from jax.experimental import pallas as pl
from jax.experimental.pallas import tpu as pltpu


def _sd_cos_kernel(s_i_ref, s_j_ref, t_i_ref, t_j_ref, out_ref, acc_ref):
    j = pl.program_id(2)

    @pl.when(j == 0)
    def _():
        acc_ref[...] = jnp.zeros_like(acc_ref)

    s_i = s_i_ref[...]      # (T, Cs)  row tile of student (channels on lanes)
    s_j = s_j_ref[...]      # (Cs, T)  col tile of student (channels on sublanes)
    t_i = t_i_ref[...]      # (T, Ct)  row tile of teacher
    t_j = t_j_ref[...]      # (Ct, T)  col tile of teacher

    # Gram tiles on the MXU, f32 accumulation / full-precision f32 passes.
    e_s = jnp.dot(s_i, s_j, preferred_element_type=jnp.float32,
                  precision=lax.Precision.HIGHEST)
    e_t = jnp.dot(t_i, t_j, preferred_element_type=jnp.float32,
                  precision=lax.Precision.HIGHEST)

    # Per-location L2 norms; only the squares are upcast (no blanket f32 copy of
    # the blocks feeding the MXU).
    ns_i = jnp.sqrt(jnp.sum((s_i * s_i).astype(jnp.float32), axis=1, keepdims=True))  # (T, 1)
    ns_j = jnp.sqrt(jnp.sum((s_j * s_j).astype(jnp.float32), axis=0, keepdims=True))  # (1, T)
    nt_i = jnp.sqrt(jnp.sum((t_i * t_i).astype(jnp.float32), axis=1, keepdims=True))
    nt_j = jnp.sqrt(jnp.sum((t_j * t_j).astype(jnp.float32), axis=0, keepdims=True))

    g_s = e_s / (ns_i * ns_j + 1e-6)
    g_t = e_t / (nt_i * nt_j + 1e-6)

    d = g_s - g_t
    # Elementwise (VPU-only) accumulation; no per-step cross-lane reduce.
    acc_ref[...] += d * d

    @pl.when(j == pl.num_programs(2) - 1)
    def _():
        # One cross-vreg reduce per (b, i): lane-dense (1, T) partial sums.
        out_ref[...] = jnp.sum(acc_ref[...], axis=0, keepdims=True)


def _pick_tile(n, cs, ct, itemsize):
    """Largest spatial tile (multiple of 128 dividing N) whose double-buffered
    input blocks + f32 accumulator stay well under v7x's 64 MiB VMEM."""
    budget = 40 * 2**20
    divisors = [c for c in (1024, 512, 256, 128) if n % c == 0]
    for cand in divisors:
        need = 2 * (2 * cand * (cs + ct) * itemsize) + 4 * cand * cand
        if need <= budget:
            return cand
    if divisors:
        return divisors[-1]
    return n   # small / ragged N: single full-extent tile


def criterion_sd_cos_no_sp(preds, soft, *, tile=None):
    """Pallas implementation of CriterionSDcos_no_sp.forward (no learnable params)."""
    xs = preds[0]   # (B, Cs, H, W) student
    xt = soft[0]    # (B, Ct, H, W) teacher
    b, cs, h, w = xs.shape
    bt, ct, ht, wt = xt.shape
    assert (b, h * w) == (bt, ht * wt), "batch / spatial extents must match"
    n = h * w

    itemsize = max(jnp.dtype(xs.dtype).itemsize, jnp.dtype(xt.dtype).itemsize)
    if tile is None:
        tile = _pick_tile(n, cs, ct, itemsize)
    assert n % tile == 0, "spatial tile must divide H*W"
    num_t = n // tile

    # Two layouts per tensor: (B, N, C) for row tiles, (B, C, N) for column tiles.
    s_cn = xs.reshape(b, cs, n)
    t_cn = xt.reshape(b, ct, n)
    s_nc = jnp.swapaxes(s_cn, 1, 2)
    t_nc = jnp.swapaxes(t_cn, 1, 2)

    # Raise scoped-VMEM only when the working set needs it (defaults are
    # 16 / 32 / 32 MiB on v5e / v6e / v7x); cap below v7x's 64 MiB physical.
    vmem_need = 2 * (2 * tile * (cs + ct) * itemsize) + 4 * tile * tile
    compiler_kwargs = dict(dimension_semantics=("parallel", "parallel", "arbitrary"))
    if vmem_need > 12 * 2**20:
        compiler_kwargs["vmem_limit_bytes"] = int(
            min(max(2 * vmem_need, 32 * 2**20), 48 * 2**20))

    partials = pl.pallas_call(
        _sd_cos_kernel,
        out_shape=jax.ShapeDtypeStruct((b, num_t, 1, tile), jnp.float32),
        grid_spec=pltpu.PrefetchScalarGridSpec(
            num_scalar_prefetch=0,
            grid=(b, num_t, num_t),
            in_specs=[
                pl.BlockSpec((pl.Squeezed(), tile, cs), lambda bb, i, j: (bb, i, 0)),
                pl.BlockSpec((pl.Squeezed(), cs, tile), lambda bb, i, j: (bb, 0, j)),
                pl.BlockSpec((pl.Squeezed(), tile, ct), lambda bb, i, j: (bb, i, 0)),
                pl.BlockSpec((pl.Squeezed(), ct, tile), lambda bb, i, j: (bb, 0, j)),
            ],
            out_specs=pl.BlockSpec((pl.Squeezed(), pl.Squeezed(), 1, tile),
                                   lambda bb, i, j: (bb, i, 0, 0)),
            scratch_shapes=[pltpu.VMEM((tile, tile), jnp.float32)],
        ),
        compiler_params=pltpu.CompilerParams(**compiler_kwargs),
    )(s_nc, s_cn, t_nc, t_cn)

    # MSELoss mean over B * N * N elements (divisor from the real array shapes).
    return jnp.sum(partials) / (b * n * n)


def _reference(preds, soft):
    def cos_graph(x):
        bb, c, h, w = x.shape
        xf = x.reshape(bb, c, h * w).astype(jnp.float32)       # (B, C, N)
        q = jnp.swapaxes(xf, 1, 2)                              # (B, N, C)
        qn = jnp.sqrt(jnp.sum(q * q, axis=2))                   # (B, N)
        nm = qn[:, :, None] * qn[:, None, :]
        energy = jnp.einsum("bnc,bcm->bnm", q, xf,
                            precision=lax.Precision.HIGHEST)
        return energy / (nm + 1e-6)

    gs = cos_graph(preds[0])
    gt = cos_graph(soft[0])
    return jnp.mean((gs - gt) ** 2)


if __name__ == "__main__":
    key = jax.random.PRNGKey(0)
    k1, k2, k3, k4 = jax.random.split(key, 4)

    # preds / soft are tuples of feature maps; only element [0] is used.
    # Student: (B=2, Cs=4, H=16, W=16); Teacher: (B=2, Ct=8, H=16, W=16).
    preds0 = jax.random.normal(k1, (2, 4, 16, 16), dtype=jnp.float32)
    preds1 = jax.random.normal(k2, (2, 4, 8, 8), dtype=jnp.float32)    # unused
    soft0 = jax.random.normal(k3, (2, 8, 16, 16), dtype=jnp.float32)
    soft1 = jax.random.normal(k4, (2, 8, 8, 8), dtype=jnp.float32)     # unused

    preds = (preds0, preds1)
    soft = (soft0, soft1)

    # tile=128 -> grid (2, 2, 2): exercises the j-reduction and both pl.when paths.
    loss = criterion_sd_cos_no_sp(preds, soft, tile=128)
    loss = jax.block_until_ready(loss)

    ref = _reference(preds, soft)
    assert jnp.allclose(loss, ref, rtol=1e-2, atol=1e-6), (loss, ref)

    print("KERNEL_OK")
</pallas_src>

<mosaic_0001>
module attributes {stable_mosaic.version = 11 : i64} {
  func.func @_sd_cos_kernel(%arg0: i32, %arg1: i32, %arg2: i32, %arg3: memref<1x128x4xf32, #tpu.memory_space<vmem>>, %arg4: memref<1x4x128xf32, #tpu.memory_space<vmem>>, %arg5: memref<1x128x8xf32, #tpu.memory_space<vmem>>, %arg6: memref<1x8x128xf32, #tpu.memory_space<vmem>>, %arg7: memref<1x1x1x128xf32, #tpu.memory_space<vmem>>, %arg8: memref<128x128xf32, #tpu.memory_space<vmem>>) attributes {dimension_semantics = [#tpu.dimension_semantics<parallel>, #tpu.dimension_semantics<parallel>, #tpu.dimension_semantics<arbitrary>], iteration_bounds = array<i64: 2, 2, 2>, scalar_prefetch = 0 : i64, scratch_operands = 1 : i64, tpu.core_type = #tpu.core_type<tc>, window_params = [{transform_indices = @transform_0, window_bounds = array<i64: 1, 128, 4>}, {transform_indices = @transform_1, window_bounds = array<i64: 1, 4, 128>}, {transform_indices = @transform_2, window_bounds = array<i64: 1, 128, 8>}, {transform_indices = @transform_3, window_bounds = array<i64: 1, 8, 128>}, {transform_indices = @transform_4, window_bounds = array<i64: 1, 1, 1, 128>}]} {
    %c0_i32 = arith.constant 0 : i32
    %0 = arith.cmpi eq, %arg2, %c0_i32 : i32
    %1 = arith.extui %0 : i1 to i32
    %c0_i32_0 = arith.constant 0 : i32
    %2 = arith.cmpi ne, %1, %c0_i32_0 : i32
    scf.if %2 {
      %cst_24 = arith.constant 0.000000e+00 : f32
      %49 = vector.broadcast %cst_24 : f32 to vector<128x128xf32>
      %c0_25 = arith.constant 0 : index
      %c0_26 = arith.constant 0 : index
      %50 = vector.load %arg8[%c0_25, %c0_26] : memref<128x128xf32, #tpu.memory_space<vmem>>, vector<128x128xf32>
      tpu.vector_store %arg8[%c0_25, %c0_26], %49 {strides = array<i32>} : memref<128x128xf32, #tpu.memory_space<vmem>>, vector<128x128xf32>,
    } else {
    }
    %c0 = arith.constant 0 : index
    %c0_1 = arith.constant 0 : index
    %c0_2 = arith.constant 0 : index
    %3 = vector.load %arg3[%c0, %c0_1, %c0_2] : memref<1x128x4xf32, #tpu.memory_space<vmem>>, vector<1x128x4xf32>
    %4 = vector.shape_cast %3 : vector<1x128x4xf32> to vector<128x4xf32>
    %c0_3 = arith.constant 0 : index
    %c0_4 = arith.constant 0 : index
    %c0_5 = arith.constant 0 : index
    %5 = vector.load %arg4[%c0_3, %c0_4, %c0_5] : memref<1x4x128xf32, #tpu.memory_space<vmem>>, vector<1x4x128xf32>
    %6 = vector.shape_cast %5 : vector<1x4x128xf32> to vector<4x128xf32>
    %c0_6 = arith.constant 0 : index
    %c0_7 = arith.constant 0 : index
    %c0_8 = arith.constant 0 : index
    %7 = vector.load %arg5[%c0_6, %c0_7, %c0_8] : memref<1x128x8xf32, #tpu.memory_space<vmem>>, vector<1x128x8xf32>
    %8 = vector.shape_cast %7 : vector<1x128x8xf32> to vector<128x8xf32>
    %c0_9 = arith.constant 0 : index
    %c0_10 = arith.constant 0 : index
    %c0_11 = arith.constant 0 : index
    %9 = vector.load %arg6[%c0_9, %c0_10, %c0_11] : memref<1x8x128xf32, #tpu.memory_space<vmem>>, vector<1x8x128xf32>
    %10 = vector.shape_cast %9 : vector<1x8x128xf32> to vector<8x128xf32>
    %cst = arith.constant dense<0.000000e+00> : vector<128x128xf32>
    %11 = tpu.matmul %4, %6, %cst {dimension_numbers = #tpu.dot_dimension_numbers<[1], [0], [0], [1], [0, 0, 1, 1], [], []>, precision = #tpu.contract_precision<fp32>} : vector<128x4xf32>, vector<4x128xf32>, vector<128x128xf32> -> vector<128x128xf32>
    %cst_12 = arith.constant dense<0.000000e+00> : vector<128x128xf32>
    %12 = tpu.matmul %8, %10, %cst_12 {dimension_numbers = #tpu.dot_dimension_numbers<[1], [0], [0], [1], [0, 0, 1, 1], [], []>, precision = #tpu.contract_precision<fp32>} : vector<128x8xf32>, vector<8x128xf32>, vector<128x128xf32> -> vector<128x128xf32>
    %13 = arith.mulf %4, %4 : vector<128x4xf32>
    %cst_13 = arith.constant dense<0.000000e+00> : vector<128xf32>
    %14 = vector.multi_reduction <add>, %13, %cst_13 [1] : vector<128x4xf32> to vector<128xf32>
    %15 = vector.shape_cast %14 : vector<128xf32> to vector<128x1xf32>
    %16 = math.sqrt %15 : vector<128x1xf32>
    %17 = arith.mulf %6, %6 : vector<4x128xf32>
    %cst_14 = arith.constant dense<0.000000e+00> : vector<128xf32>
    %18 = vector.multi_reduction <add>, %17, %cst_14 [0] : vector<4x128xf32> to vector<128xf32>
    %19 = vector.shape_cast %18 : vector<128xf32> to vector<1x128xf32>
    %20 = math.sqrt %19 : vector<1x128xf32>
    %21 = arith.mulf %8, %8 : vector<128x8xf32>
    %cst_15 = arith.constant dense<0.000000e+00> : vector<128xf32>
    %22 = vector.multi_reduction <add>, %21, %cst_15 [1] : vector<128x8xf32> to vector<128xf32>
    %23 = vector.shape_cast %22 : vector<128xf32> to vector<128x1xf32>
    %24 = math.sqrt %23 : vector<128x1xf32>
    %25 = arith.mulf %10, %10 : vector<8x128xf32>
    %cst_16 = arith.constant dense<0.000000e+00> : vector<128xf32>
    %26 = vector.multi_reduction <add>, %25, %cst_16 [0] : vector<8x128xf32> to vector<128xf32>
    %27 = vector.shape_cast %26 : vector<128xf32> to vector<1x128xf32>
    %28 = math.sqrt %27 : vector<1x128xf32>
    %29 = vector.broadcast %16 : vector<128x1xf32> to vector<128x128xf32>
    %30 = vector.broadcast %20 : vector<1x128xf32> to vector<128x128xf32>
    %31 = arith.mulf %29, %30 : vector<128x128xf32>
    %cst_17 = arith.constant 9.99999997E-7 : f32
    %32 = vector.broadcast %cst_17 : f32 to vector<128x128xf32>
    %33 = arith.addf %31, %32 : vector<128x128xf32>
    %34 = arith.divf %11, %33 : vector<128x128xf32>
    %35 = vector.broadcast %24 : vector<128x1xf32> to vector<128x128xf32>
    %36 = vector.broadcast %28 : vector<1x128xf32> to vector<128x128xf32>
    %37 = arith.mulf %35, %36 : vector<128x128xf32>
    %cst_18 = arith.constant 9.99999997E-7 : f32
    %38 = vector.broadcast %cst_18 : f32 to vector<128x128xf32>
    %39 = arith.addf %37, %38 : vector<128x128xf32>
    %40 = arith.divf %12, %39 : vector<128x128xf32>
    %41 = arith.subf %34, %40 : vector<128x128xf32>
    %c0_19 = arith.constant 0 : index
    %c0_20 = arith.constant 0 : index
    %42 = vector.load %arg8[%c0_19, %c0_20] : memref<128x128xf32, #tpu.memory_space<vmem>>, vector<128x128xf32>
    %43 = arith.mulf %41, %41 : vector<128x128xf32>
    %44 = arith.addf %42, %43 : vector<128x128xf32>
    %c0_21 = arith.constant 0 : index
    %c0_22 = arith.constant 0 : index
    %45 = vector.load %arg8[%c0_21, %c0_22] : memref<128x128xf32, #tpu.memory_space<vmem>>, vector<128x128xf32>
    tpu.vector_store %arg8[%c0_21, %c0_22], %44 {strides = array<i32>} : memref<128x128xf32, #tpu.memory_space<vmem>>, vector<128x128xf32>,
    %c1_i32 = arith.constant 1 : i32
    %46 = arith.cmpi eq, %arg2, %c1_i32 : i32
    %47 = arith.extui %46 : i1 to i32
    %c0_i32_23 = arith.constant 0 : i32
    %48 = arith.cmpi ne, %47, %c0_i32_23 : i32
    scf.if %48 {
      %c0_24 = arith.constant 0 : index
      %c0_25 = arith.constant 0 : index
      %49 = vector.load %arg8[%c0_24, %c0_25] : memref<128x128xf32, #tpu.memory_space<vmem>>, vector<128x128xf32>
      %cst_26 = arith.constant dense<0.000000e+00> : vector<128xf32>
      %50 = vector.multi_reduction <add>, %49, %cst_26 [0] : vector<128x128xf32> to vector<128xf32>
      %51 = vector.shape_cast %50 : vector<128xf32> to vector<1x128xf32>
      %c0_27 = arith.constant 0 : index
      %c0_28 = arith.constant 0 : index
      %c0_29 = arith.constant 0 : index
      %c0_30 = arith.constant 0 : index
      %52 = vector.load %arg7[%c0_27, %c0_28, %c0_29, %c0_30] : memref<1x1x1x128xf32, #tpu.memory_space<vmem>>, vector<1x1x1x128xf32>
      %53 = vector.shape_cast %52 : vector<1x1x1x128xf32> to vector<1x128xf32>
      %54 = vector.shape_cast %51 : vector<1x128xf32> to vector<1x1x1x128xf32>
      tpu.vector_store %arg7[%c0_27, %c0_28, %c0_29, %c0_30], %54 {strides = array<i32>} : memref<1x1x1x128xf32, #tpu.memory_space<vmem>>, vector<1x1x1x128xf32>,
    } else {
    }
    return
  }
  func.func @transform_0(%arg0: i32, %arg1: i32, %arg2: i32) -> (i32, i32, i32) {
    %c0_i32 = arith.constant 0 : i32
    %c0_i32_0 = arith.constant 0 : i32
    return %arg0, %arg1, %c0_i32 : i32, i32, i32
  }
  func.func @transform_1(%arg0: i32, %arg1: i32, %arg2: i32) -> (i32, i32, i32) {
    %c0_i32 = arith.constant 0 : i32
    %c0_i32_0 = arith.constant 0 : i32
    return %arg0, %c0_i32, %arg2 : i32, i32, i32
  }
  func.func @transform_2(%arg0: i32, %arg1: i32, %arg2: i32) -> (i32, i32, i32) {
    %c0_i32 = arith.constant 0 : i32
    %c0_i32_0 = arith.constant 0 : i32
    return %arg0, %arg1, %c0_i32 : i32, i32, i32
  }
  func.func @transform_3(%arg0: i32, %arg1: i32, %arg2: i32) -> (i32, i32, i32) {
    %c0_i32 = arith.constant 0 : i32
    %c0_i32_0 = arith.constant 0 : i32
    return %arg0, %c0_i32, %arg2 : i32, i32, i32
  }
  func.func @transform_4(%arg0: i32, %arg1: i32, %arg2: i32) -> (i32, i32, i32, i32) {
    %c0_i32 = arith.constant 0 : i32
    %c0_i32_0 = arith.constant 0 : i32
    %c0_i32_1 = arith.constant 0 : i32
    return %arg0, %arg1, %c0_i32, %c0_i32_0 : i32, i32, i32, i32
  }
}

</mosaic_0001>

<bundles_post_ra>
// kernel: tpu_custom_call.1
= control target key start
LH: loop header
LB: loop body
LE: loop exit
PB: predicated region body
PF: predicated region fallthrough
CT: control target
= control target key end

     0   :  { %9 = vsyncpa [#allocation4], 0  ;;  %s5984_s0 = inlined_call_operand.vmem [shape: f32[2,256,4], index: 0, kind: input, shape index: {}]   ;;  %s5985_s1 = inlined_call_operand.vmem [shape: f32[2,4,256], index: 1, kind: input, shape index: {}]   ;;  %s5986_s2 = inlined_call_operand.vmem [shape: f32[2,256,8], index: 2, kind: input, shape index: {}]   ;;  %s5987_s3 = inlined_call_operand.vmem [shape: f32[2,8,256], index: 3, kind: input, shape index: {}]   ;;  %s5988_s4 = inlined_call_operand.hbm [shape: f32[2,2,1,128], index: 4, kind: output, shape index: {}]  }
   0x1   :  { %11 = vsyncpa [#allocation4 + $0x1], 0  ;;  %s4505_s15 = smov 0   ;;  %s4507_s16 = smov 0  }
   0x2   :  { %s4509_s17 = smov 0   ;;  %s4511_s18 = smov 0  }
   0x3   :  { %s4513_s19 = smov 0   ;;  %s4515_s20 = smov 0  }
   0x4   :  { %s4517_s21 = smov 0   ;;  %s4519_s22 = smov 0  }
   0x5   :  { %s4521_s23 = smov 0   ;;  %s4523_s24 = smov 0  }
   0x6 LB: > { %6124 = sst [smem:[#allocation6_spill]] %s4448_s17  ;;  %s3448_s25 = sadd.s32 4294967295, %s4476_s24   ;;  %s4476_s24 = sphi %s4523_s24, %s17_s24   ;;  %s4472_s23 = sphi %s4521_s23, %s6304_s23   ;;  %s4468_s22 = sphi %s4519_s22, %s6303_s22   ;;  %s4464_s21 = sphi %s4517_s21, %s6302_s21   ;;  %s4460_s20 = sphi %s4515_s20, %s6301_s20   ;;  %s4456_s19 = sphi %s4513_s19, %s6300_s19   ;;  %s4452_s18 = sphi %s4511_s18, %s6308_s18   ;;  %s4448_s17 = sphi %s4509_s17, %s6307_s17   ;;  %s4444_s16 = sphi %s4507_s16, %s6306_s16   ;;  %s4440_s15 = sphi %s4505_s15, %s6305_s15  }
   0x7   : > { %6125 = sst [smem:[#allocation7_spill]] %s4464_s21  ;;  %s3449_s26 = sadd.s32 4294967294, %s4476_s24  }
   0x8   : > { %6126 = sst [smem:[#allocation8_spill]] %s4468_s22  ;;  %s29_s27 = sadd.s32 1, %s4464_s21 }
   0x9   : > { %6127 = sst [smem:[#allocation9_spill]] %s4472_s23  ;;  %p30_p0 = scmp.ge.s32.totalorder %s29_s27, 2 }
   0xa   : > { %s32_s28 = sadd.s32 1, %s4468_s22  ;;  %s36_s29 = sadd.s32 1, %s4472_s23 }
   0xb   : > { %p167_p1 = scmp.ne.s32.totalorder %s4448_s17, %s4444_s16  ;;  %s6310_s27 = smov (%p30_p0, %s29_s27), 0 }
   0xc   : > { %6128 = sst [smem:[#allocation10_spill]] %s6310_s27  ;;  %s6312_s28 = smov (!%p30_p0, %s32_s28), %s4468_s22 }
   0xd   : > { %p168_p2 = scmp.eq.s32.totalorder %s3448_s25, 7  ;;  %p173_p3 = scmp.ne.s32.totalorder %s4444_s16, %s4440_s15 }
   0xe   : > { %p34_p4 = scmp.ge.s32.totalorder %s6312_s28, 2  ;;  %p174_p5 = scmp.eq.s32.totalorder %s3449_s26, 7 }
   0xf   : > { %p4567_p6 = por %p168_p2, %p167_p1  ;;  %p3452_p8 = scmp.ge.s32.totalorder %s4476_s24, 1 }
  0x10   : > { %s6314_s28 = smov (%p34_p4, %s6312_s28), 0  ;;  %s6316_s29 = smov (!%p34_p4, %s36_s29), %s4472_s23 }
  0x11   : > { %6130 = sst [smem:[#allocation11_spill]] %s6314_s28  ;;  %p4574_p7 = por %p174_p5, %p173_p3 }
  0x12   : > { %p38_p9 = scmp.ge.s32.totalorder %s6316_s29, 2  ;;  %p240_p10 = scmp.lt.s32.totalorder %s4476_s24, 9 }
  0x13   : > { %s153_s6 = ssub.s32 %s4468_s22, %s6314_s28  ;;  %s157_s9 = sadd.s32 1, %s4448_s17 }
  0x14   : > { %s6318_s29 = smov (%p38_p9, %s6316_s29), 0  ;;  %p241_p11 = pnand %p3452_p8, %p240_p10 }
  0x15   : > { %6132 = sst [smem:[#allocation12_spill]] %s6318_s29  ;;  %s152_s7 = ssub.s32 %s4472_s23, %s6318_s29 }
  0x16   : > { %s154_s8 = sor.u32 %s153_s6, %s152_s7  ;;  %244 = sbr.rel (%p241_p11) target bundleno = 540 (0x21c), region = 36 }
  0x17   : > { %p155_p12 = scmp.eq.s32.totalorder %s154_s8, 0 }
  0x19   : > { %s4588_s10 = scalar_select %p155_p12, %s4448_s17, %s157_s9  }
  0x1b   : > { %6133 = sst [smem:[#allocation13_spill]] %s4588_s10 }
  0x1d   : > { %s3453_s12 = sshll.u32 %s4456_s19, 4  ;;  %p295_p13 = scmp.lt.s32.totalorder %s4460_s20, 1 }
  0x1e   : > { %p297_p0 = scmp.lt.s32.totalorder %s3453_s12, 31  ;;  %p306_p1 = scmp.lt.s32.totalorder %s4452_s18, 1 }
  0x1f   : > { %s296_s13 = scalar_select %p295_p13, %s4460_s20, 1 }
  0x20   : > { %s6320_s12 = smov (!%p297_p0, %s3453_s12), 31  ;;  %s6134_s7 = sand.u32 1, %s4444_s16  }
  0x21   : > { %s3454_s14 = sshll.u32 %s296_s13, 5  ;;  %s3456_s6 = sshll.u32 %s296_s13, 1 }
  0x22   : > { %s300_s25 = sadd.s32 %s3454_s14, %s6320_s12  ;;  %s4616_s8 = scalar_lea.vmem [#allocation3], %s6134_s7 }
  0x23   : > { %s3455_s26 = sshll.u32 %s300_s25, 3  ;;  %p3463_p2 = scmp.ne.s32.totalorder %s4452_s18, 0 }
  0x24   : > { %s4598_s9 = scalar_lea.vmem %s5984_s0, %s3455_s26  ;;  %s4603_s11 = scalar_lea.vmem %s5986_s2, %s3455_s26  ;;  %v4478_v0 = vmov (!%p3463_p2), 0.0  }
  0x25   : > { %s307_s27 = scalar_select %p306_p1, %s4452_s18, 1 }
  0x26   : > { %333 = sbr.rel (%p3463_p2) target bundleno = 46 (0x2e), region = 40  ;;  %334 = vst [vmem:[#allocation2] sm:$0xff] (!%p3463_p2), %v4478_v0  ;;  %335 = vst [vmem:[#allocation2 + $0x8] sm:$0xff] (!%p3463_p2), %v4478_v0 }
  0x27   : > { %s309_s23 = sadd.s32 %s3456_s6, %s307_s27  ;;  %336 = vst [vmem:[#allocation2 + $0x10] sm:$0xff] (!%p3463_p2), %v4478_v0  ;;  %337 = vst [vmem:[#allocation2 + $0x18] sm:$0xff] (!%p3463_p2), %v4478_v0 }
  0x28   : > { %s3457_s22 = sshll.u32 %s309_s23, 2  ;;  %s3462_s21 = sshll.u32 %s309_s23, 3  ;;  %338 = vst [vmem:[#allocation2 + $0x20] sm:$0xff] (!%p3463_p2), %v4478_v0  ;;  %339 = vst [vmem:[#allocation2 + $0x28] sm:$0xff] (!%p3463_p2), %v4478_v0 }
  0x29   : > { %s311_s12 = scalar_lea.vmem %s5985_s1, %s3457_s22  ;;  %s4612_s25 = scalar_lea.vmem %s5987_s3, %s3462_s21  ;;  %340 = vst [vmem:[#allocation2 + $0x30] sm:$0xff] (!%p3463_p2), %v4478_v0  ;;  %341 = vst [vmem:[#allocation2 + $0x38] sm:$0xff] (!%p3463_p2), %v4478_v0 }
  0x2a   : > { %342 = vst [vmem:[#allocation2 + $0x40] sm:$0xff] (!%p3463_p2), %v4478_v0  ;;  %343 = vst [vmem:[#allocation2 + $0x48] sm:$0xff] (!%p3463_p2), %v4478_v0 }
  0x2b   : > { %344 = vst [vmem:[#allocation2 + $0x50] sm:$0xff] (!%p3463_p2), %v4478_v0  ;;  %345 = vst [vmem:[#allocation2 + $0x58] sm:$0xff] (!%p3463_p2), %v4478_v0 }
  0x2c   : > { %346 = vst [vmem:[#allocation2 + $0x60] sm:$0xff] (!%p3463_p2), %v4478_v0  ;;  %347 = vst [vmem:[#allocation2 + $0x68] sm:$0xff] (!%p3463_p2), %v4478_v0 }
  0x2d   : > { %348 = vst [vmem:[#allocation2 + $0x70] sm:$0xff] %v4478_v0  ;;  %349 = vst [vmem:[#allocation2 + $0x78] sm:$0xff] %v4478_v0 }
  0x2e PF: > { %v366_v1 = vld [vmem:[%s311_s12] sm:$0xf]  ;;  %vm433_vm0 = vcmask 1043456   ;;  %vm384_vm1 = vcmask 31744   ;;  %v4629_v8 = vld [vmem:[%s4598_s9 + $0x8] sm:$0xff]  ;;  %vm1528_vm2 = vcmask 64512  }
  0x2f   : > { %v383_v2 = vld [vmem:[%s4612_s25] sm:$0xff]  ;;  %v435_v4 = vsel %vm433_vm0, %v366_v1, 0  ;;  %v2844_v5 = vmul.f32 %v366_v1, %v366_v1  ;;  %v389_v11 = vsel %vm384_vm1, %v4629_v8, 0  ;;  %v4638_v12 = vld [vmem:[%s4603_s11 + $0x8] sm:$0xff]  ;;  %v4693_v34 = vld [vmem:[%s4598_s9 + $0x10] sm:$0xff]  ;;  %p3464_p3 = scmp.ne.s32.totalorder %s4452_s18, 1 }
  0x30   : > { %v4621_v3 = vld [vmem:[%s4598_s9] sm:$0xff]  ;;  %v4623_v6 = vand.u32 4294901760, %v383_v2  ;;  %v4631_v9 = vand.u32 4294901760, %v435_v4  ;;  %6136 = vst [vmem:[#allocation15_spill] sm:$0xff] %v4638_v12  ;;  %v4661_v20 = vand.u32 4294901760, %v389_v11  ;;  %v1533_v21 = vsel %vm1528_vm2, %v4638_v12, 0 }
  0x31   : > { %v4626_v7 = vld [vmem:[%s4603_s11] sm:$0xff]  ;;  %v386_v10 = vsel %vm384_vm1, %v4621_v3, 0  ;;  %v4640_v13 = vsel %vm433_vm0, %v2844_v5, 0.0  ;;  %v4678_v27 = vand.u32 4294901760, %v1533_v21  ;;  %v4696_v35 = vld [vmem:[%s4603_s11 + $0x10] sm:$0xff]  ;;  %v4706_v42 = vld [vmem:[%s4598_s9 + $0x18] sm:$0xff] }
  0x32   : > { %6135 = vst [vmem:[#allocation14_spill] sm:$0xff] %v4626_v7  ;;  %6137 = vst [vmem:[#allocation16_spill] sm:$0xff] %v4640_v13  ;;  %3829 = vmatprep.subr.mxu1 %v4623_v6  ;;  %v4643_v14 = vand.u32 4294901760, %v386_v10  ;;  %v1530_v15 = vsel %vm1528_vm2, %v4626_v7, 0  ;;  %3673 = vmatprep.subr.mxu0 %v4631_v9  ;;  %v4650_v16 = vsub.f32 %v435_v4, %v4631_v9  ;;  %v4709_v43 = vld [vmem:[%s4603_s11 + $0x18] sm:$0xff]  ;;  %v392_v45 = vsel %vm384_vm1, %v4693_v34, 0 }
  0x33   : > { %3830 = vmatpush3.msra.mxu1 %v4623_v6  ;;  %v4652_v17 = vand.u32 4294901760, %v1530_v15  ;;  %v4655_v18 = vsub.f32 %v383_v2, %v4623_v6  ;;  %3674 = vmatpush3.msra.mxu0 %v4631_v9  ;;  %v4676_v26 = vsub.f32 %v389_v11, %v4661_v20  ;;  %v4690_v33 = vsub.f32 %v1533_v21, %v4678_v27  ;;  %v4721_v50 = vld [vmem:[%s4598_s9 + $0x20] sm:$0xff]  ;;  %v4727_v52 = vld [vmem:[%s4598_s9 + $0x28] sm:$0xff]  ;;  %v5024_v12 = vld [vmem:[%s4603_s11 + $0x70] sm:$0xff] }
  0x34   : > { %v4659_v19 = vsub.f32 %v386_v10, %v4643_v14  ;;  %v4666_v22 = vand.u32 4294901760, %v4650_v16  ;;  %6144 = vst [vmem:[#allocation23_spill] sm:$0xff] %v4696_v35  ;;  %6145 = vst [vmem:[#allocation24_spill] sm:$0xff] %v4709_v43  ;;  %v1536_v46 = vsel %vm1528_vm2, %v4696_v35, 0  ;;  %v4718_v49 = vand.u32 4294901760, %v392_v45  ;;  %v4724_v51 = vld [vmem:[%s4603_s11 + $0x20] sm:$0xff] }
  0x35   : > { %v4669_v23 = vsub.f32 %v1530_v15, %v4652_v17  ;;  %v4672_v24 = vand.u32 4294901760, %v4655_v18  ;;  %6142 = vst [vmem:[#allocation21_spill] sm:$0xff] %v4676_v26  ;;  %v6003_v32 = vand.u32 4294901760, %v4676_v26  ;;  %6143 = vst [vmem:[#allocation22_spill] sm:$0xff] %v4690_v33  ;;  %v5998_v41 = vand.u32 4294901760, %v4690_v33  ;;  %v4743_v60 = vld [vmem:[%s4603_s11 + $0x28] sm:$0xff] }
  0x36   : > { %6138 = vst [vmem:[#allocation17_spill] sm:$0xff] %v4659_v19  ;;  %6139 = vst [vmem:[#allocation18_spill] sm:$0xff] %v4666_v22  ;;  %v6005_v25 = vand.u32 4294901760, %v4659_v19  ;;  %v667_v28 = vsub.f32 %v4650_v16, %v4666_v22  ;;  %v4729_v53 = vand.u32 4294901760, %v1536_v46  ;;  %v395_v54 = vsel %vm384_vm1, %v4706_v42, 0  ;;  %v4939_v22 = vld [vmem:[%s4598_s9 + $0x60] sm:$0xff] }
  0x37   : > { %6140 = vst [vmem:[#allocation19_spill] sm:$0xff] %v4669_v23  ;;  %6141 = vst [vmem:[#allocation20_spill] sm:$0xff] %v4672_v24  ;;  %v6004_v29 = vand.u32 4294901760, %v4669_v23  ;;  %v1807_v30 = vsub.f32 %v4655_v18, %v4672_v24  ;;  %v516_v40 = vsub.f32 %v4676_v26, %v6003_v32  ;;  %v1656_v48 = vsub.f32 %v4690_v33, %v5998_v41  ;;  %v4942_v33 = vld [vmem:[%s4603_s11 + $0x60] sm:$0xff] }
  0x38   : > { %v506_v31 = vsub.f32 %v4659_v19, %v6005_v25  ;;  %v668_v36 = vand.u32 4294901760, %v667_v28  ;;  %6146 = vst [vmem:[#allocation25_spill] sm:$0xff] %v4724_v51  ;;  %v1539_v55 = vsel %vm1528_vm2, %v4709_v43, 0  ;;  %v4736_v57 = vsub.f32 %v392_v45, %v4718_v49  ;;  %6148 = vst [vmem:[#allocation27_spill] sm:$0xff] %v4743_v60 }
  0x39   : > { %v1646_v37 = vsub.f32 %v4669_v23, %v6004_v29  ;;  %v1808_v38 = vand.u32 4294901760, %v1807_v30  ;;  %v517_v47 = vand.u32 4294901760, %v516_v40  ;;  %v1657_v56 = vand.u32 4294901760, %v1656_v48  ;;  %6175 = vst [vmem:[#allocation51_spill] sm:$0xff] %v4942_v33  ;;  %6192 = vst [vmem:[#allocation67_spill] sm:$0xff] %v5024_v12 }
  0x3a   : > { %v507_v39 = vand.u32 4294901760, %v506_v31  ;;  %3699 = vmatprep.subr.mxu0 %v668_v36  ;;  %6147 = vst [vmem:[#allocation26_spill] sm:$0xff] %v4736_v57  ;;  %v4738_v58 = vand.u32 4294901760, %v395_v54  ;;  %v4740_v59 = vand.u32 4294901760, %v1539_v55  ;;  %v4746_v61 = vsub.f32 %v1536_v46, %v4729_v53 }
  0x3b   : > { %v1647_v44 = vand.u32 4294901760, %v1646_v37  ;;  %3855 = vmatprep.subr.mxu1 %v1808_v38  ;;  %v398_v62 = vsel %vm384_vm1, %v4721_v50, 0  ;;  %v1542_v63 = vsel %vm1528_vm2, %v4724_v51, 0  ;;  %v401_v0 = vsel %vm384_vm1, %v4727_v52, 0 }
  0x3c   : > { %3675 = vmatprep.mubr.f32.mxu0 %v507_v39  ;;  %6149 = vst [vmem:[#allocation28_spill] sm:$0xff] %v4746_v61  ;;  %v6002_v1 = vand.u32 4294901760, %v4736_v57  ;;  %v4756_v2 = vsub.f32 %v395_v54, %v4738_v58  ;;  %v4759_v4 = vsub.f32 %v1539_v55, %v4740_v59  ;;  %v4761_v5 = vand.u32 4294901760, %v398_v62 }
  0x3d   : > { %3831 = vmatprep.mubr.f32.mxu1 %v1647_v44  ;;  %3676 = vmatmul.mubr.f32.vlgmr.msra.gmra.mrb[0].mxu0 %v517_v47  ;;  %v5997_v10 = vand.u32 4294901760, %v4746_v61  ;;  %v4765_v11 = vand.u32 4294901760, %v1542_v63  ;;  %v4767_v15 = vand.u32 4294901760, %v401_v0  ;;  %v1545_v21 = vsel %vm1528_vm2, %v4743_v60, 0  ;;  %v4792_v44 = vld [vmem:[%s4598_s9 + $0x30] sm:$0xff] }
  0x3e   : > { %3700 = vmatpush3.msra.mxu0 %v668_v36  ;;  %3832 = vmatmul.mubr.f32.vlgmr.msra.gmra.mrb[0].mxu1 %v1657_v56  ;;  %6150 = vst [vmem:[#allocation29_spill] sm:$0xff] %v4756_v2  ;;  %6151 = vst [vmem:[#allocation30_spill] sm:$0xff] %v4759_v4  ;;  %v526_v28 = vsub.f32 %v4736_v57, %v6002_v1  ;;  %v5995_v30 = vand.u32 4294901760, %v4756_v2  ;;  %v5996_v31 = vand.u32 4294901760, %v4759_v4  ;;  %v4789_v40 = vand.u32 4294901760, %v1545_v21  ;;  %v4839_v1 = vld [vmem:[%s4603_s11 + $0x40] sm:$0xff] }
  0x3f   : > { %3725 = vmatprep.subr.mxu0 %v4650_v16  ;;  %3856 = vmatpush3.msra.mxu1 %v1808_v38  ;;  %v4777_v36 = vsub.f32 %v398_v62, %v4761_v5  ;;  %v1666_v37 = vsub.f32 %v4746_v61, %v5997_v10  ;;  %v4784_v38 = vsub.f32 %v1542_v63, %v4765_v11  ;;  %v4807_v63 = vld [vmem:[%s4603_s11 + $0x30] sm:$0xff]  ;;  %v404_v10 = vsel %vm384_vm1, %v4792_v44, 0 }
  0x40   : > { %3881 = vmatprep.subr.mxu1 %v4655_v18  ;;  %v4787_v39 = vsub.f32 %v401_v0, %v4767_v15  ;;  %v527_v45 = vand.u32 4294901760, %v526_v28  ;;  %v536_v46 = vsub.f32 %v4756_v2, %v5995_v30  ;;  %v1676_v47 = vsub.f32 %v4759_v4, %v5996_v31  ;;  %6156 = vst [vmem:[#allocation35_spill] sm:$0xff] %v4807_v63  ;;  %v4810_v0 = vld [vmem:[%s4598_s9 + $0x38] sm:$0xff] }
  0x41   : > { %6152 = vst [vmem:[#allocation31_spill] sm:$0xff] %v4777_v36  ;;  %6153 = vst [vmem:[#allocation32_spill] sm:$0xff] %v4784_v38  ;;  %v5999_v48 = vand.u32 4294901760, %v4777_v36  ;;  %v1667_v54 = vand.u32 4294901760, %v1666_v37  ;;  %v6000_v55 = vand.u32 4294901760, %v4784_v38  ;;  %v4804_v62 = vsub.f32 %v1545_v21, %v4789_v40  ;;  %v4813_v28 = vld [vmem:[%s4603_s11 + $0x38] sm:$0xff] }
  0x42   : > { %6154 = vst [vmem:[#allocation33_spill] sm:$0xff] %v4787_v39  ;;  %v6001_v56 = vand.u32 4294901760, %v4787_v39  ;;  %6157 = vst [vmem:[#allocation36_spill] sm:$0xff] %v4813_v28  ;;  %3678 = vmatprep.mubr.f32.mxu0 %v527_v45  ;;  %v537_v30 = vand.u32 4294901760, %v536_v46  ;;  %v1677_v31 = vand.u32 4294901760, %v1676_v47  ;;  %v4827_v46 = vand.u32 4294901760, %v404_v10 }
  0x43   : > { %6155 = vst [vmem:[#allocation34_spill] sm:$0xff] %v4804_v62  ;;  %v546_v37 = vsub.f32 %v4777_v36, %v5999_v48  ;;  %3834 = vmatprep.mubr.f32.mxu1 %v1667_v54  ;;  %v1686_v21 = vsub.f32 %v4784_v38, %v6000_v55  ;;  %v6010_v45 = vand.u32 4294901760, %v4804_v62  ;;  %v4830_v47 = vld [vmem:[%s4598_s9 + $0x40] sm:$0xff]  ;;  %v1548_v54 = vsel %vm1528_vm2, %v4807_v63, 0  ;;  %6158 = vst [vmem:[#allocation37_spill] sm:$0xff] %v4839_v1 }
  0x44   : > { %v556_v41 = vsub.f32 %v4787_v39, %v6001_v56  ;;  %3679 = vmatmul.mubr.f32.gmra.mrb[2].mxu0 %v537_v30  ;;  %3835 = vmatmul.mubr.f32.gmra.mrb[2].mxu1 %v1677_v31  ;;  %v407_v55 = vsel %vm384_vm1, %v4810_v0, 0  ;;  %v1551_v56 = vsel %vm1528_vm2, %v4813_v28, 0  ;;  %v4845_v31 = vsub.f32 %v404_v10, %v4827_v46  ;;  %v4856_v39 = vld [vmem:[%s4598_s9 + $0x48] sm:$0xff] }
  0x45   : > { %v547_v48 = vand.u32 4294901760, %v546_v37  ;;  %v1687_v32 = vand.u32 4294901760, %v1686_v21  ;;  %v1696_v30 = vsub.f32 %v4804_v62, %v6010_v45  ;;  %v4847_v37 = vand.u32 4294901760, %v1548_v54 }
  0x46   : > { %v557_v29 = vand.u32 4294901760, %v556_v41  ;;  %6159 = vst [vmem:[#allocation38_spill] sm:$0xff] %v4845_v31  ;;  %v4849_v25 = vand.u32 4294901760, %v407_v55  ;;  %v4851_v13 = vand.u32 4294901760, %v1551_v56  ;;  %v410_v63 = vsel %vm384_vm1, %v4830_v47, 0  ;;  %v4859_v41 = vld [vmem:[%s4603_s11 + $0x48] sm:$0xff] }
  0x47   : > { %3681 = vmatprep.mubr.f32.mxu0 %v547_v48  ;;  %6160 = vst [vmem:[#allocation39_spill] sm:$0xff] %v4859_v41  ;;  %3837 = vmatprep.mubr.f32.mxu1 %v1687_v32  ;;  %v1697_v21 = vand.u32 4294901760, %v1696_v30  ;;  %v6018_v45 = vand.u32 4294901760, %v4845_v31  ;;  %v4862_v10 = vand.u32 4294901760, %v410_v63  ;;  %v1554_v48 = vsel %vm1528_vm2, %v4839_v1, 0 }
  0x48   : > { %3682 = vmatmul.mubr.f32.gmra.mrb[4].mxu0 %v557_v29  ;;  %v4867_v62 = vsub.f32 %v1548_v54, %v4847_v37  ;;  %v4870_v28 = vsub.f32 %v407_v55, %v4849_v25  ;;  %v4873_v38 = vsub.f32 %v1551_v56, %v4851_v13  ;;  %v4875_v32 = vand.u32 4294901760, %v1554_v48 }
  0x49   : > { %3838 = vmatmul.mubr.f32.gmra.mrb[4].mxu1 %v1697_v21  ;;  %v566_v30 = vsub.f32 %v4845_v31, %v6018_v45  ;;  %v4881_v51 = vsub.f32 %v410_v63, %v4862_v10  ;;  %v413_v29 = vsel %vm384_vm1, %v4856_v39, 0  ;;  %v1557_v55 = vsel %vm1528_vm2, %v4859_v41, 0  ;;  %v4894_v45 = vld [vmem:[%s4598_s9 + $0x50] sm:$0xff] }
  0x4a   : > { %6161 = vst [vmem:[#allocation40_spill] sm:$0xff] %v4867_v62  ;;  %6162 = vst [vmem:[#allocation41_spill] sm:$0xff] %v4870_v28  ;;  %v6031_v54 = vand.u32 4294901760, %v4867_v62  ;;  %v4891_v21 = vsub.f32 %v1554_v48, %v4875_v32  ;;  %v4897_v4 = vand.u32 4294901760, %v413_v29  ;;  %v4899_v41 = vand.u32 4294901760, %v1557_v55 }
  0x4b   : > { %6163 = vst [vmem:[#allocation42_spill] sm:$0xff] %v4873_v38  ;;  %6164 = vst [vmem:[#allocation43_spill] sm:$0xff] %v4881_v51  ;;  %v567_v63 = vand.u32 4294901760, %v566_v30  ;;  %v6038_v31 = vand.u32 4294901760, %v4881_v51  ;;  %v6167_v1 = vand.u32 4294901760, %v4870_v28  ;;  %v6168_v36 = vand.u32 4294901760, %v4873_v38 }
  0x4c   : > { %6165 = vst [vmem:[#allocation44_spill] sm:$0xff] %v4891_v21  ;;  %6166 = vst [vmem:[#allocation45_spill] sm:$0xff] %v4899_v41  ;;  %v1706_v56 = vsub.f32 %v4867_v62, %v6031_v54  ;;  %v4915_v60 = vsub.f32 %v413_v29, %v4897_v4  ;;  %v4918_v54 = vsub.f32 %v1557_v55, %v4899_v41 }
  0x4d   : > { %v576_v48 = vsub.f32 %v4870_v28, %v6167_v1  ;;  %v1716_v24 = vsub.f32 %v4873_v38, %v6168_v36  ;;  %3684 = vmatprep.mubr.f32.mxu0 %v567_v63  ;;  %v586_v2 = vsub.f32 %v4881_v51, %v6038_v31  ;;  %v416_v1 = vsel %vm384_vm1, %v4894_v45, 0  ;;  %v4923_v28 = vld [vmem:[%s4603_s11 + $0x50] sm:$0xff]  ;;  %v4926_v36 = vld [vmem:[%s4598_s9 + $0x58] sm:$0xff] }
  0x4e   : > { %6169 = vst [vmem:[#allocation46_spill] sm:$0xff] %v4915_v60  ;;  %6170 = vst [vmem:[#allocation47_spill] sm:$0xff] %v4918_v54  ;;  %v4929_v63 = vld [vmem:[%s4603_s11 + $0x58] sm:$0xff]  ;;  %v1707_v30 = vand.u32 4294901760, %v1706_v56  ;;  %v6173_v31 = vand.u32 4294901760, %v4891_v21  ;;  %v6051_v55 = vand.u32 4294901760, %v4915_v60 }
  0x4f   : > { %6171 = vst [vmem:[#allocation48_spill] sm:$0xff] %v4923_v28  ;;  %6172 = vst [vmem:[#allocation49_spill] sm:$0xff] %v4929_v63  ;;  %v577_v38 = vand.u32 4294901760, %v576_v48  ;;  %v1717_v62 = vand.u32 4294901760, %v1716_v24  ;;  %v587_v51 = vand.u32 4294901760, %v586_v2  ;;  %v6054_v61 = vand.u32 4294901760, %v4918_v54 }
  0x50   : > { %v1726_v29 = vsub.f32 %v4891_v21, %v6173_v31  ;;  %v4936_v35 = vand.u32 4294901760, %v416_v1  ;;  %3840 = vmatprep.mubr.f32.mxu1 %v1707_v30  ;;  %v1560_v24 = vsel %vm1528_vm2, %v4923_v28, 0  ;;  %v419_v2 = vsel %vm384_vm1, %v4926_v36, 0 }
  0x51   : > { %3685 = vmatmul.mubr.f32.gmra.mrb[6].mxu0 %v577_v38  ;;  %v1563_v31 = vsel %vm1528_vm2, %v4929_v63, 0  ;;  %3841 = vmatmul.mubr.f32.gmra.mrb[6].mxu1 %v1717_v62  ;;  %v596_v48 = vsub.f32 %v4915_v60, %v6051_v55  ;;  %v1736_v38 = vsub.f32 %v4918_v54, %v6054_v61  ;;  %v4961_v28 = vand.u32 4294901760, %v419_v2  ;;  %v4970_v55 = vld [vmem:[%s4598_s9 + $0x68] sm:$0xff] }
  0x52   : > { %6174 = vst [vmem:[#allocation50_spill] sm:$0xff] %v4936_v35  ;;  %v1727_v56 = vand.u32 4294901760, %v1726_v29  ;;  %3687 = vmatprep.mubr.f32.mxu0 %v587_v51  ;;  %v4957_v30 = vsub.f32 %v416_v1, %v4936_v35  ;;  %v4959_v29 = vand.u32 4294901760, %v1560_v24  ;;  %v4963_v21 = vand.u32 4294901760, %v1563_v31  ;;  %v4973_v60 = vld [vmem:[%s4603_s11 + $0x68] sm:$0xff] }
  0x53   : > { %6178 = vst [vmem:[#allocation54_spill] sm:$0xff] %v4961_v28  ;;  %v422_v51 = vsel %vm384_vm1, %v4939_v22, 0  ;;  %v1566_v62 = vsel %vm1528_vm2, %v4942_v33, 0  ;;  %6180 = vst [vmem:[#allocation56_spill] sm:$0xff] %v4973_v60  ;;  %v597_v61 = vand.u32 4294901760, %v596_v48  ;;  %v1737_v1 = vand.u32 4294901760, %v1736_v38 }
  0x54   : > { %6176 = vst [vmem:[#allocation52_spill] sm:$0xff] %v4957_v30  ;;  %6177 = vst [vmem:[#allocation53_spill] sm:$0xff] %v4959_v29  ;;  %3843 = vmatprep.mubr.f32.mxu1 %v1727_v56  ;;  %v6064_v54 = vand.u32 4294901760, %v4957_v30  ;;  %v4977_v56 = vsub.f32 %v1560_v24, %v4959_v29  ;;  %v4980_v63 = vsub.f32 %v419_v2, %v4961_v28  ;;  %v4985_v26 = vand.u32 4294901760, %v422_v51 }
  0x55   : > { %6179 = vst [vmem:[#allocation55_spill] sm:$0xff] %v4963_v21  ;;  %v4983_v57 = vsub.f32 %v1563_v31, %v4963_v21  ;;  %v4987_v33 = vand.u32 4294901760, %v1566_v62  ;;  %3688 = vmatmul.mubr.f32.gmra.mrb[8].mxu0 %v597_v61  ;;  %3844 = vmatmul.mubr.f32.gmra.mrb[8].mxu1 %v1737_v1  ;;  %v425_v24 = vsel %vm384_vm1, %v4970_v55, 0  ;;  %v1569_v2 = vsel %vm1528_vm2, %v4973_v60, 0 }
  0x56   : > { %6181 = vst [vmem:[#allocation57_spill] sm:$0xff] %v4977_v56  ;;  %6182 = vst [vmem:[#allocation58_spill] sm:$0xff] %v4980_v63  ;;  %v606_v48 = vsub.f32 %v4957_v30, %v6064_v54  ;;  %v6078_v31 = vand.u32 4294901760, %v4980_v63  ;;  %v5000_v61 = vsub.f32 %v422_v51, %v4985_v26  ;;  %v5006_v54 = vld [vmem:[%s4598_s9 + $0x70] sm:$0xff]  ;;  %v6189_v30 = vand.u32 4294901760, %v4977_v56 }
  0x57   : > { %6183 = vst [vmem:[#allocation59_spill] sm:$0xff] %v4983_v57  ;;  %6184 = vst [vmem:[#allocation60_spill] sm:$0xff] %v4985_v26  ;;  %v6081_v43 = vand.u32 4294901760, %v4983_v57  ;;  %v5003_v1 = vsub.f32 %v1566_v62, %v4987_v33  ;;  %v5011_v7 = vand.u32 4294901760, %v425_v24  ;;  %v5013_v60 = vand.u32 4294901760, %v1569_v2 }
  0x58   : > { %6185 = vst [vmem:[#allocation61_spill] sm:$0xff] %v4987_v33  ;;  %6186 = vst [vmem:[#allocation62_spill] sm:$0xff] %v5000_v61  ;;  %v607_v38 = vand.u32 4294901760, %v606_v48  ;;  %v1746_v23 = vsub.f32 %v4977_v56, %v6189_v30  ;;  %v616_v51 = vsub.f32 %v4980_v63, %v6078_v31  ;;  %v428_v31 = vsel %vm384_vm1, %v5006_v54, 0  ;;  %v5035_v63 = vld [vmem:[%s4598_s9 + $0x78] sm:$0xff] }
  0x59   : > { %6187 = vst [vmem:[#allocation63_spill] sm:$0xff] %v5003_v1  ;;  %6188 = vst [vmem:[#allocation64_spill] sm:$0xff] %v5006_v54  ;;  %v1756_v62 = vsub.f32 %v4983_v57, %v6081_v43  ;;  %v5027_v56 = vsub.f32 %v425_v24, %v5011_v7  ;;  %v5030_v33 = vsub.f32 %v1569_v2, %v5013_v60  ;;  %v6195_v48 = vand.u32 4294901760, %v5000_v61 }
  0x5a   : > { %6190 = vst [vmem:[#allocation65_spill] sm:$0xff] %v5011_v7  ;;  %6191 = vst [vmem:[#allocation66_spill] sm:$0xff] %v5013_v60  ;;  %3690 = vmatprep.mubr.f32.mxu0 %v607_v38  ;;  %v1747_v30 = vand.u32 4294901760, %v1746_v23  ;;  %v617_v43 = vand.u32 4294901760, %v616_v51  ;;  %v6196_v38 = vand.u32 4294901760, %v5003_v1  ;;  %v5045_v60 = vand.u32 4294901760, %v428_v31 }
  0x5b   : > { %6193 = vst [vmem:[#allocation68_spill] sm:$0xff] %v5027_v56  ;;  %6194 = vst [vmem:[#allocation69_spill] sm:$0xff] %v5030_v33  ;;  %v1757_v19 = vand.u32 4294901760, %v1756_v62  ;;  %v626_v57 = vsub.f32 %v5000_v61, %v6195_v48  ;;  %v6094_v24 = vand.u32 4294901760, %v5027_v56  ;;  %v6097_v2 = vand.u32 4294901760, %v5030_v33  ;;  %v5050_v51 = vld [vmem:[%s4603_s11 + $0x78] sm:$0xff] }
  0x5c   : > { %v1766_v23 = vsub.f32 %v5003_v1, %v6196_v38  ;;  %3846 = vmatprep.mubr.f32.mxu1 %v1747_v30  ;;  %6197 = vst [vmem:[#allocation70_spill] sm:$0xff] %v5045_v60  ;;  %v1572_v7 = vsel %vm1528_vm2, %v5024_v12, 0  ;;  %3691 = vmatmul.mubr.f32.gmra.mrb[10].mxu0 %v617_v43  ;;  %v431_v30 = vsel %vm384_vm1, %v5035_v63, 0  ;;  %v5063_v12 = vsub.f32 %v428_v31, %v5045_v60 }
  0x5d   : > { %3847 = vmatmul.mubr.f32.gmra.mrb[10].mxu1 %v1757_v19  ;;  %v627_v62 = vand.u32 4294901760, %v626_v57  ;;  %v5052_v61 = vand.u32 4294901760, %v1572_v7  ;;  %v636_v38 = vsub.f32 %v5027_v56, %v6094_v24  ;;  %v1776_v1 = vsub.f32 %v5030_v33, %v6097_v2 }
  0x5e   : > { %v1767_v48 = vand.u32 4294901760, %v1766_v23  ;;  %v5065_v43 = vand.u32 4294901760, %v431_v30  ;;  %v1575_v57 = vsel %vm1528_vm2, %v5050_v51, 0  ;;  %v6100_v24 = vand.u32 4294901760, %v5063_v12 }
  0x5f   : > { %6198 = vst [vmem:[#allocation71_spill] sm:$0xff] %v5052_v61  ;;  %3693 = vmatprep.mubr.f32.mxu0 %v627_v62  ;;  %v5068_v19 = vsub.f32 %v1572_v7, %v5052_v61  ;;  %v637_v23 = vand.u32 4294901760, %v636_v38  ;;  %v1777_v54 = vand.u32 4294901760, %v1776_v1  ;;  %v5077_v2 = vand.u32 4294901760, %v1575_v57 }
  0x60   : > { %6199 = vst [vmem:[#allocation72_spill] sm:$0xff] %v5065_v43  ;;  %3849 = vmatprep.mubr.f32.mxu1 %v1767_v48  ;;  %v5074_v56 = vsub.f32 %v431_v30, %v5065_v43  ;;  %v646_v7 = vsub.f32 %v5063_v12, %v6100_v24 }
  0x61   : > { %v6101_v31 = vand.u32 4294901760, %v5068_v19  ;;  %6200 = vst [vmem:[#allocation73_spill] sm:$0xff] %v5077_v2  ;;  %3694 = vmatmul.mubr.f32.gmra.mrb[12].mxu0 %v637_v23  ;;  %3850 = vmatmul.mubr.f32.gmra.mrb[12].mxu1 %v1777_v54  ;;  %v5087_v48 = vsub.f32 %v1575_v57, %v5077_v2  ;;  %v2670_v57 = vmul.f32 %v4693_v34, %v4693_v34 }
  0x62   : > { %v6103_v62 = vand.u32 4294901760, %v5074_v56  ;;  %v647_v30 = vand.u32 4294901760, %v646_v7  ;;  %v2668_v7 = vmul.f32 %v4621_v3, %v4621_v3  ;;  %v2669_v34 = vmul.f32 %v4629_v8, %v4629_v8 }
  0x63   : > { %v1786_v1 = vsub.f32 %v5068_v19, %v6101_v31  ;;  %v6102_v54 = vand.u32 4294901760, %v5087_v48  ;;  %v2673_v8 = vmul.f32 %v4727_v52, %v4727_v52  ;;  %v2675_v52 = vmul.f32 %v4810_v0, %v4810_v0 }
  0x64   : > { %v656_v38 = vsub.f32 %v5074_v56, %v6103_v62  ;;  %3696 = vmatprep.mubr.f32.mxu0 %v647_v30  ;;  %v2684_v30 = vsel %vm384_vm1, %v2668_v7, 0.0  ;;  %v2677_v0 = vmul.f32 %v4856_v39, %v4856_v39  ;;  %v2679_v39 = vmul.f32 %v4926_v36, %v4926_v36  ;;  %v6228_v62 = vld [vmem:[#allocation40_spill] sm:$0xff] }
  0x65   : > { %v1787_v23 = vand.u32 4294901760, %v1786_v1  ;;  %v1796_v24 = vsub.f32 %v5087_v48, %v6102_v54  ;;  %v2690_v1 = vsel %vm384_vm1, %v2670_v57, 0.0  ;;  %2685 = vadd.xlane.f32.xlu0 %v2684_v30  ;;  %v2681_v36 = vmul.f32 %v4970_v55, %v4970_v55  ;;  %v6225_v54 = vld [vmem:[#allocation38_spill] sm:$0xff] }
  0x66   : > { %v657_v33 = vand.u32 4294901760, %v656_v38  ;;  %2691 = vadd.xlane.f32.xlu1 %v2690_v1  ;;  %v2717_v7 = vsel %vm384_vm1, %v2679_v39, 0.0  ;;  %v2683_v55 = vmul.f32 %v5035_v63, %v5035_v63  ;;  %v6211_v39 = vld [vmem:[#allocation26_spill] sm:$0xff] }
  0x67   : > { %3852 = vmatprep.mubr.f32.mxu1 %v1787_v23  ;;  %v1797_v31 = vand.u32 4294901760, %v1796_v24  ;;  %v2687_v24 = vsel %vm384_vm1, %v2669_v34, 0.0  ;;  %v2711_v23 = vsel %vm384_vm1, %v2677_v0, 0.0  ;;  %v2723_v30 = vsel %vm384_vm1, %v2681_v36, 0.0  ;;  %v6201_v34 = vld [vmem:[#allocation61_spill] sm:$0xff]  ;;  %v6208_v0 = vld [vmem:[#allocation19_spill] sm:$0xff] }
  0x68   : > { %3697 = vmatmul.mubr.f32.gmra.mrb[14].mxu0 %v657_v33  ;;  %v2671_v33 = vmul.f32 %v4706_v42, %v4706_v42  ;;  %v2699_v42 = vsel %vm384_vm1, %v2673_v8, 0.0  ;;  %v2729_v8 = vsel %vm384_vm1, %v2683_v55, 0.0  ;;  %v6214_v36 = vld [vmem:[#allocation23_spill] sm:$0xff] }
  0x69   : > { %3701 = vmatprep.mubr.f32.mxu0 %v4643_v14  ;;  %3853 = vmatmul.mubr.f32.gmra.mrb[14].mxu1 %v1797_v31  ;;  %v2705_v31 = vsel %vm384_vm1, %v2675_v52, 0.0  ;;  %v6206_v52 = vld [vmem:[#allocation17_spill] sm:$0xff]  ;;  %v6216_v55 = vld [vmem:[#allocation27_spill] sm:$0xff] }
  0x6a   : > { %3857 = vmatprep.mubr.f32.mxu1 %v4652_v17  ;;  %v2693_v3 = vsel %vm384_vm1, %v2671_v33, 0.0  ;;  %2688 = vadd.xlane.f32.xlu0 %v2687_v24  ;;  %v6203_v24 = vld [vmem:[#allocation65_spill] sm:$0xff] }
  0x6b   : > { %2694 = vadd.xlane.f32.xlu1 %v2693_v3  ;;  %v6202_v3 = vld [vmem:[#allocation64_spill] sm:$0xff] }
  0x6c   : > { %3702 = vmatmul.mubr.f32.vlgmr.msra.gmra.mrb[0].mxu0 %v4661_v20 }
  0x6d   : > { %3726 = vmatpush3.msra.mxu0 %v4650_v16  ;;  %3704 = vmatprep.mubr.f32.mxu0 %v4718_v49  ;;  %v2672_v16 = vmul.f32 %v4721_v50, %v4721_v50  ;;  %v2674_v50 = vmul.f32 %v4792_v44, %v4792_v44  ;;  %v2676_v44 = vmul.f32 %v4830_v47, %v4830_v47 }
  0x6e   : > { %3751 = vmatprep.subr.mxu0 %v4631_v9  ;;  %3858 = vmatmul.mubr.f32.vlgmr.msra.gmra.mrb[0].mxu1 %v4678_v27  ;;  %v2678_v47 = vmul.f32 %v4894_v45, %v4894_v45  ;;  %v2680_v45 = vmul.f32 %v4939_v22, %v4939_v22  ;;  %v2682_v22 = vmul.f32 %v6202_v3, %v6202_v3 }
  0x6f   : > { %3882 = vmatpush3.msra.mxu1 %v4655_v18  ;;  %3860 = vmatprep.mubr.f32.mxu1 %v4729_v53  ;;  %v2696_v18 = vsel %vm384_vm1, %v2672_v16, 0.0  ;;  %v2702_v38 = vsel %vm384_vm1, %v2674_v50, 0.0  ;;  %v2708_v57 = vsel %vm384_vm1, %v2676_v44, 0.0  ;;  %v6204_v16 = vld [vmem:[#allocation66_spill] sm:$0xff]  ;;  %v6209_v44 = vld [vmem:[#allocation24_spill] sm:$0xff]  ;;  %v2864_v3 = vmul.f32 %v6216_v55, %v6216_v55  ;;  %v6224_v55 = vld [vmem:[#allocation33_spill] sm:$0xff] }
  0x70   : > { %3705 = vmatmul.mubr.f32.gmra.mrb[2].mxu0 %v4738_v58  ;;  %3907 = vmatprep.subr.mxu1 %v4623_v6  ;;  %v2714_v1 = vsel %vm384_vm1, %v2678_v47, 0.0  ;;  %v2720_v33 = vsel %vm384_vm1, %v2680_v45, 0.0  ;;  %v6212_v47 = vld [vmem:[#allocation22_spill] sm:$0xff]  ;;  %v2861_v45 = vmul.f32 %v6214_v36, %v6214_v36 }
  0x71   : > { %3707 = vmatprep.mubr.f32.mxu0 %v4761_v5  ;;  %2700 = vadd.xlane.f32.xlu1 %v2699_v42  ;;  %v2726_v42 = vsel %vm384_vm1, %v2682_v22, 0.0  ;;  %v6217_v22 = vld [vmem:[#allocation29_spill] sm:$0xff] }
  0x72   : > { %3861 = vmatmul.mubr.f32.gmra.mrb[2].mxu1 %v4740_v59  ;;  %2697 = vadd.xlane.f32.xlu0 %v2696_v18  ;;  %v6205_v18 = vld [vmem:[#allocation15_spill] sm:$0xff] }
  0x73   : > { %3863 = vmatprep.mubr.f32.mxu1 %v4765_v11  ;;  %v2860_v63 = vmul.f32 %v6205_v18, %v6205_v18  ;;  %v6220_v18 = vld [vmem:[#allocation30_spill] sm:$0xff] }
  0x74   : > { %3708 = vmatmul.mubr.f32.gmra.mrb[4].mxu0 %v4767_v15 }
  0x75   : > { %3710 = vmatprep.mubr.f32.mxu0 %v4827_v46  ;;  %2706 = vadd.xlane.f32.xlu1 %v2705_v31  ;;  %v2878_v50 = vsel %vm1528_vm2, %v2860_v63, 0.0  ;;  %v6207_v31 = vld [vmem:[#allocation14_spill] sm:$0xff]  ;;  %v2881_v63 = vsel %vm1528_vm2, %v2861_v45, 0.0 }
  0x76   : > { %3864 = vmatmul.mubr.f32.gmra.mrb[4].mxu1 %v4789_v40  ;;  %2703 = vadd.xlane.f32.xlu0 %v2702_v38  ;;  %v2859_v38 = vmul.f32 %v6207_v31, %v6207_v31 }
  0x77   : > { %3866 = vmatprep.mubr.f32.mxu1 %v4847_v37 }
  0x78   : > { %3711 = vmatmul.mubr.f32.gmra.mrb[6].mxu0 %v4849_v25 }
  0x79   : > { %3713 = vmatprep.mubr.f32.mxu0 %v4862_v10  ;;  %2712 = vadd.xlane.f32.xlu1 %v2711_v23  ;;  %v2862_v23 = vmul.f32 %v6209_v44, %v6209_v44  ;;  %v2890_v44 = vsel %vm1528_vm2, %v2864_v3, 0.0 }
  0x7a   : > { %3867 = vmatmul.mubr.f32.gmra.mrb[6].mxu1 %v4851_v13  ;;  %2709 = vadd.xlane.f32.xlu0 %v2708_v57  ;;  %v6210_v57 = vld [vmem:[#allocation21_spill] sm:$0xff] }
  0x7b   : > { %3869 = vmatprep.mubr.f32.mxu1 %v4875_v32 }
  0x7c   : > { %3714 = vmatmul.mubr.f32.gmra.mrb[8].mxu0 %v4897_v4 }
  0x7d   : > { %3716 = vmatprep.mubr.f32.mxu0 %v4936_v35  ;;  %2718 = vadd.xlane.f32.xlu1 %v2717_v7  ;;  %v6213_v7 = vld [vmem:[#allocation18_spill] sm:$0xff]  ;;  %v6247_v35 = vld [vmem:[#allocation68_spill] sm:$0xff] }
  0x7e   : > { %3870 = vmatmul.mubr.f32.gmra.mrb[8].mxu1 %v4899_v41  ;;  %2715 = vadd.xlane.f32.xlu0 %v2714_v1  ;;  %v2875_v1 = vsel %vm1528_vm2, %v2859_v38, 0.0  ;;  %v6222_v38 = vld [vmem:[#allocation32_spill] sm:$0xff]  ;;  %v6246_v41 = vld [vmem:[#allocation63_spill] sm:$0xff] }
  0x7f   : > { %3872 = vmatprep.mubr.f32.mxu1 %v4959_v29  ;;  %v6243_v29 = vld [vmem:[#allocation62_spill] sm:$0xff] }
  0x80   : > { %3717 = vmatmul.mubr.f32.gmra.mrb[10].mxu0 %v4961_v28  ;;  %v6242_v28 = vld [vmem:[#allocation58_spill] sm:$0xff] }
  0x81   : > { %3719 = vmatprep.mubr.f32.mxu0 %v4985_v26  ;;  %2724 = vadd.xlane.f32.xlu1 %v2723_v30  ;;  %v6215_v30 = vld [vmem:[#allocation28_spill] sm:$0xff] }
  0x82   : > { %3873 = vmatmul.mubr.f32.gmra.mrb[10].mxu1 %v4963_v21  ;;  %2721 = vadd.xlane.f32.xlu0 %v2720_v33  ;;  %v2884_v33 = vsel %vm1528_vm2, %v2862_v23, 0.0  ;;  %v6223_v23 = vld [vmem:[#allocation36_spill] sm:$0xff]  ;;  %v6240_v21 = vld [vmem:[#allocation57_spill] sm:$0xff] }
  0x83   : > { %3875 = vmatprep.mubr.f32.mxu1 %v6201_v34  ;;  %v2866_v36 = vmul.f32 %v6223_v23, %v6223_v23  ;;  %v6237_v34 = vld [vmem:[#allocation52_spill] sm:$0xff] }
  0x84   : > { %3720 = vmatmul.mubr.f32.gmra.mrb[12].mxu0 %v6203_v24  ;;  %v6236_v24 = vld [vmem:[#allocation46_spill] sm:$0xff]  ;;  %v6241_v26 = vld [vmem:[#allocation56_spill] sm:$0xff] }
  0x85   : > { %3722 = vmatprep.mubr.f32.mxu0 %v5045_v60  ;;  %2730 = vadd.xlane.f32.xlu1 %v2729_v8  ;;  %v6218_v8 = vld [vmem:[#allocation20_spill] sm:$0xff]  ;;  %v2896_v3 = vsel %vm1528_vm2, %v2866_v36, 0.0  ;;  %v6235_v60 = vld [vmem:[#allocation49_spill] sm:$0xff] }
  0x86   : > { %3876 = vmatmul.mubr.f32.gmra.mrb[12].mxu1 %v6204_v16  ;;  %2727 = vadd.xlane.f32.xlu0 %v2726_v42  ;;  %v6219_v42 = vld [vmem:[#allocation31_spill] sm:$0xff]  ;;  %v6234_v16 = vld [vmem:[#allocation44_spill] sm:$0xff] }
  0x87   : > { %3878 = vmatprep.mubr.f32.mxu1 %v5052_v61  ;;  %v6231_v61 = vld [vmem:[#allocation43_spill] sm:$0xff] }
  0x88   : > { %3723 = vmatmul.mubr.f32.gmra.mrb[14].mxu0 %v5065_v43  ;;  %v6230_v43 = vld [vmem:[#allocation41_spill] sm:$0xff] }
  0x89   : > { %3727 = vmatprep.mubr.f32.mxu0 %v6206_v52  ;;  %2879 = vadd.xlane.f32.xlu1 %v2878_v50  ;;  %v6221_v50 = vld [vmem:[#allocation25_spill] sm:$0xff] }
  0x8a   : > { %3879 = vmatmul.mubr.f32.gmra.mrb[14].mxu1 %v5077_v2  ;;  %2876 = vadd.xlane.f32.xlu0 %v2875_v1  ;;  %v2863_v31 = vmul.f32 %v6221_v50, %v6221_v50  ;;  %v6226_v1 = vld [vmem:[#allocation34_spill] sm:$0xff]  ;;  %v6229_v2 = vld [vmem:[#allocation39_spill] sm:$0xff] }
  0x8b   : > { %3883 = vmatprep.mubr.f32.mxu1 %v6208_v0  ;;  %v2868_v23 = vmul.f32 %v6229_v2, %v6229_v2  ;;  %v2870_v2 = vmul.f32 %v6235_v60, %v6235_v60  ;;  %v2872_v60 = vmul.f32 %v6241_v26, %v6241_v26  ;;  %v2874_v26 = vmul.f32 %v5050_v51, %v5050_v51  ;;  %v6250_v51 = vld [vmem:[#allocation67_spill] sm:$0xff] }
  0x8c   : > { %3728 = vmatmul.mubr.f32.vlgmr.msra.gmra.mrb[0].mxu0 %v6210_v57  ;;  %v2887_v45 = vsel %vm1528_vm2, %v2863_v31, 0.0 }
  0x8d   : > { %3752 = vmatpush3.msra.mxu0 %v4631_v9  ;;  %3730 = vmatprep.mubr.f32.mxu0 %v6211_v39  ;;  %v2902_v36 = vsel %vm1528_vm2, %v2868_v23, 0.0  ;;  %v2908_v23 = vsel %vm1528_vm2, %v2870_v2, 0.0  ;;  %v2914_v2 = vsel %vm1528_vm2, %v2872_v60, 0.0  ;;  %v6249_v60 = vand.u32 4294901760, %v6206_v52 }
  0x8e   : > { %3884 = vmatmul.mubr.f32.vlgmr.msra.gmra.mrb[0].mxu1 %v6212_v47  ;;  %3777 = vmatprep.subr.mxu0 %v6213_v7  ;;  %v6254_v52 = vand.u32 4294901760, %v6212_v47  ;;  %v6258_v47 = vand.u32 4294901760, %v6220_v18 }
  0x8f   : > { %3908 = vmatpush3.msra.mxu1 %v4623_v6  ;;  %3886 = vmatprep.mubr.f32.mxu1 %v6215_v30 }
  0x90   : > { %3731 = vmatmul.mubr.f32.gmra.mrb[2].mxu0 %v6217_v22  ;;  %3933 = vmatprep.subr.mxu1 %v6218_v8 }
  0x91   : > { %3733 = vmatprep.mubr.f32.mxu0 %v6219_v42  ;;  %2885 = vadd.xlane.f32.xlu1 %v2884_v33  ;;  %v6227_v33 = vld [vmem:[#allocation35_spill] sm:$0xff] }
  0x92   : > { %3887 = vmatmul.mubr.f32.gmra.mrb[2].mxu1 %v6220_v18  ;;  %2882 = vadd.xlane.f32.xlu0 %v2881_v63  ;;  %v2865_v50 = vmul.f32 %v6227_v33, %v6227_v33  ;;  %v6232_v63 = vld [vmem:[#allocation42_spill] sm:$0xff]  ;;  %v6265_v18 = vand.u32 4294901760, %v6231_v61 }
  0x93   : > { %3889 = vmatprep.mubr.f32.mxu1 %v6222_v38 }
  0x94   : > { %3734 = vmatmul.mubr.f32.gmra.mrb[4].mxu0 %v6224_v55  ;;  %v2893_v31 = vsel %vm1528_vm2, %v2865_v50, 0.0 }
  0x95   : > { %3736 = vmatprep.mubr.f32.mxu0 %v6225_v54  ;;  %2891 = vadd.xlane.f32.xlu1 %v2890_v44  ;;  %v6233_v44 = vld [vmem:[#allocation37_spill] sm:$0xff] }
  0x96   : > { %3890 = vmatmul.mubr.f32.gmra.mrb[4].mxu1 %v6226_v1  ;;  %2888 = vadd.xlane.f32.xlu0 %v2887_v45  ;;  %v2867_v33 = vmul.f32 %v6233_v44, %v6233_v44  ;;  %v6238_v45 = vld [vmem:[#allocation47_spill] sm:$0xff] }
  0x97   : > { %3892 = vmatprep.mubr.f32.mxu1 %v6228_v62 }
  0x98   : > { %3737 = vmatmul.mubr.f32.gmra.mrb[6].mxu0 %v6230_v43  ;;  %v2899_v50 = vsel %vm1528_vm2, %v2867_v33, 0.0 }
  0x99   : > { %3739 = vmatprep.mubr.f32.mxu0 %v6231_v61  ;;  %2897 = vadd.xlane.f32.xlu1 %v2896_v3  ;;  %v6239_v3 = vld [vmem:[#allocation48_spill] sm:$0xff]  ;;  %v6272_v61 = vand.u32 4294901760, %v6242_v28 }
  0x9a   : > { %3893 = vmatmul.mubr.f32.gmra.mrb[6].mxu1 %v6232_v63  ;;  %2894 = vadd.xlane.f32.xlu0 %v2893_v31  ;;  %v2869_v44 = vmul.f32 %v6239_v3, %v6239_v3  ;;  %v6244_v31 = vld [vmem:[#allocation59_spill] sm:$0xff] }
  0x9b   : > { %3895 = vmatprep.mubr.f32.mxu1 %v6234_v16 }
  0x9c   : > { %3740 = vmatmul.mubr.f32.gmra.mrb[8].mxu0 %v6236_v24  ;;  %v2905_v33 = vsel %vm1528_vm2, %v2869_v44, 0.0 }
  0x9d   : > { %3742 = vmatprep.mubr.f32.mxu0 %v6237_v34  ;;  %2903 = vadd.xlane.f32.xlu1 %v2902_v36  ;;  %v6245_v36 = vld [vmem:[#allocation51_spill] sm:$0xff] }
  0x9e   : > { %3896 = vmatmul.mubr.f32.gmra.mrb[8].mxu1 %v6238_v45  ;;  %2900 = vadd.xlane.f32.xlu0 %v2899_v50  ;;  %v2871_v3 = vmul.f32 %v6245_v36, %v6245_v36  ;;  %v6248_v50 = vld [vmem:[#allocation69_spill] sm:$0xff]  ;;  %v6251_v36 = vand.u32 4294901760, %v6208_v0  ;;  %v6255_v0 = vand.u32 4294901760, %v6215_v30  ;;  %v6261_v30 = vand.u32 4294901760, %v6225_v54 }
  0x9f   : > { %3898 = vmatprep.mubr.f32.mxu1 %v6240_v21  ;;  %v6268_v54 = vand.u32 4294901760, %v6236_v24  ;;  %v6275_v24 = vand.u32 4294901760, %v6246_v41 }
  0xa0   : > { %3743 = vmatmul.mubr.f32.gmra.mrb[10].mxu0 %v6242_v28  ;;  %v2911_v44 = vsel %vm1528_vm2, %v2871_v3, 0.0  ;;  %v6252_v3 = vand.u32 4294901760, %v6210_v57  ;;  %v6256_v57 = vand.u32 4294901760, %v6217_v22  ;;  %v6262_v22 = vand.u32 4294901760, %v6226_v1 }
  0xa1   : > { %3745 = vmatprep.mubr.f32.mxu0 %v6243_v29  ;;  %2909 = vadd.xlane.f32.xlu1 %v2908_v23  ;;  %v2920_v23 = vsel %vm1528_vm2, %v2874_v26, 0.0  ;;  %v6269_v1 = vand.u32 4294901760, %v6237_v34  ;;  %v6276_v34 = vand.u32 4294901760, %v6247_v35  ;;  %v6279_v28 = vand.u32 4294901760, %v5068_v19 }
  0xa2   : > { %3899 = vmatmul.mubr.f32.gmra.mrb[10].mxu1 %v6244_v31  ;;  %2906 = vadd.xlane.f32.xlu0 %v2905_v33  ;;  %v2873_v33 = vmul.f32 %v6250_v51, %v6250_v51  ;;  %v6293_v51 = vld [vmem:[#allocation72_spill] sm:$0xff] }
  0xa3   : > { %3901 = vmatprep.mubr.f32.mxu1 %v6246_v41  ;;  %v6281_v41 = vand.u32 4294901760, %v5087_v48 }
  0xa4   : > { %3746 = vmatmul.mubr.f32.gmra.mrb[12].mxu0 %v6247_v35  ;;  %v2917_v26 = vsel %vm1528_vm2, %v2873_v33, 0.0  ;;  %v6285_v35 = vld [vmem:[#allocation54_spill] sm:$0xff]  ;;  %v6294_v33 = vld [vmem:[#allocation73_spill] sm:$0xff] }
  0xa5   : > { %3748 = vmatprep.mubr.f32.mxu0 %v5063_v12  ;;  %2915 = vadd.xlane.f32.xlu1 %v2914_v2  ;;  %v6253_v2 = vand.u32 4294901760, %v6211_v39  ;;  %v6257_v39 = vand.u32 4294901760, %v6219_v42  ;;  %v6264_v42 = vand.u32 4294901760, %v6230_v43  ;;  %v6271_v43 = vand.u32 4294901760, %v6240_v21 }
  0xa6   : > { %3902 = vmatmul.mubr.f32.gmra.mrb[12].mxu1 %v6248_v50  ;;  %2912 = vadd.xlane.f32.xlu0 %v2911_v44  ;;  %v6263_v44 = vand.u32 4294901760, %v6228_v62  ;;  %v6270_v62 = vand.u32 4294901760, %v6238_v45  ;;  %v6277_v45 = vand.u32 4294901760, %v5063_v12  ;;  %v6278_v21 = vand.u32 4294901760, %v6248_v50  ;;  %v6284_v12 = vld [vmem:[#allocation53_spill] sm:$0xff]  ;;  %v6290_v50 = vld [vmem:[#allocation70_spill] sm:$0xff] }
  0xa7   : > { %3904 = vmatprep.mubr.f32.mxu1 %v5068_v19  ;;  %v6287_v19 = vld [vmem:[#allocation55_spill] sm:$0xff] }
  0xa8   : > { %3749 = vmatmul.mubr.f32.gmra.mrb[14].mxu0 %v5074_v56 }
  0xa9   : > { %3753 = vmatprep.mubr.f32.mxu0 %v6249_v60  ;;  %2921 = vadd.xlane.f32.xlu1 %v2920_v23  ;;  %v6291_v23 = vld [vmem:[#allocation66_spill] sm:$0xff]  ;;  %v6292_v60 = vld [vmem:[#allocation71_spill] sm:$0xff] }
  0xaa   : > { %3905 = vmatmul.mubr.f32.gmra.mrb[14].mxu1 %v5087_v48  ;;  %2918 = vadd.xlane.f32.xlu0 %v2917_v26  ;;  %v6288_v48 = vld [vmem:[#allocation61_spill] sm:$0xff] }
  0xab   : > { %3909 = vmatprep.mubr.f32.mxu1 %v6251_v36 }
  0xac   : > { %3754 = vmatmul.mubr.f32.vlgmr.msra.gmra.mrb[0].mxu0 %v6252_v3 }
  0xad   : > { %3778 = vmatpush3.msra.mxu0 %v6213_v7  ;;  %3756 = vmatprep.mubr.f32.mxu0 %v6253_v2  ;;  %v6259_v7 = vand.u32 4294901760, %v6222_v38  ;;  %v6266_v38 = vand.u32 4294901760, %v6232_v63  ;;  %v6273_v63 = vand.u32 4294901760, %v6243_v29  ;;  %v6280_v29 = vand.u32 4294901760, %v5074_v56  ;;  %v6286_v56 = vld [vmem:[#allocation60_spill] sm:$0xff] }
  0xae   : > { %3910 = vmatmul.mubr.f32.vlgmr.msra.gmra.mrb[0].mxu1 %v6254_v52  ;;  %3803 = vmatprep.subr.mxu0 %v4631_v9 }
  0xaf   : > { %3934 = vmatpush3.msra.mxu1 %v6218_v8  ;;  %3912 = vmatprep.mubr.f32.mxu1 %v6255_v0  ;;  %v6260_v8 = vand.u32 4294901760, %v6224_v55  ;;  %v6267_v55 = vand.u32 4294901760, %v6234_v16  ;;  %v6274_v16 = vand.u32 4294901760, %v6244_v31  ;;  %v6289_v31 = vld [vmem:[#allocation65_spill] sm:$0xff] }
  0xb0   : > { %3757 = vmatmul.mubr.f32.gmra.mrb[2].mxu0 %v6256_v57  ;;  %3959 = vmatprep.subr.mxu1 %v4623_v6 }
  0xb1   : > { %3759 = vmatprep.mubr.f32.mxu0 %v6257_v39 }
  0xb2   : > { %3913 = vmatmul.mubr.f32.gmra.mrb[2].mxu1 %v6258_v47 }
  0xb3   : > { %3915 = vmatprep.mubr.f32.mxu1 %v6259_v7 }
  0xb4   : > { %3760 = vmatmul.mubr.f32.gmra.mrb[4].mxu0 %v6260_v8 }
  0xb5   : > { %3762 = vmatprep.mubr.f32.mxu0 %v6261_v30 }
  0xb6   : > { %3916 = vmatmul.mubr.f32.gmra.mrb[4].mxu1 %v6262_v22 }
  0xb7   : > { %3918 = vmatprep.mubr.f32.mxu1 %v6263_v44 }
  0xb8   : > { %3763 = vmatmul.mubr.f32.gmra.mrb[6].mxu0 %v6264_v42 }
  0xb9   : > { %3765 = vmatprep.mubr.f32.mxu0 %v6265_v18 }
  0xba   : > { %3919 = vmatmul.mubr.f32.gmra.mrb[6].mxu1 %v6266_v38 }
  0xbb   : > { %3921 = vmatprep.mubr.f32.mxu1 %v6267_v55 }
  0xbc   : > { %3766 = vmatmul.mubr.f32.gmra.mrb[8].mxu0 %v6268_v54 }
  0xbd   : > { %3768 = vmatprep.mubr.f32.mxu0 %v6269_v1 }
  0xbe   : > { %3922 = vmatmul.mubr.f32.gmra.mrb[8].mxu1 %v6270_v62 }
  0xbf   : > { %3924 = vmatprep.mubr.f32.mxu1 %v6271_v43 }
  0xc0   : > { %3769 = vmatmul.mubr.f32.gmra.mrb[10].mxu0 %v6272_v61 }
  0xc1   : > { %3771 = vmatprep.mubr.f32.mxu0 %v6273_v63 }
  0xc2   : > { %3925 = vmatmul.mubr.f32.gmra.mrb[10].mxu1 %v6274_v16 }
  0xc3   : > { %3927 = vmatprep.mubr.f32.mxu1 %v6275_v24 }
  0xc4   : > { %3772 = vmatmul.mubr.f32.gmra.mrb[12].mxu0 %v6276_v34 }
  0xc5   : > { %3774 = vmatprep.mubr.f32.mxu0 %v6277_v45 }
  0xc6   : > { %3928 = vmatmul.mubr.f32.gmra.mrb[12].mxu1 %v6278_v21 }
  0xc7   : > { %3930 = vmatprep.mubr.f32.mxu1 %v6279_v28 }
  0xc8   : > { %3775 = vmatmul.mubr.f32.gmra.mrb[14].mxu0 %v6280_v29 }
  0xc9   : > { %3779 = vmatprep.mubr.f32.mxu0 %v4643_v14 }
  0xca   : > { %3931 = vmatmul.mubr.f32.gmra.mrb[14].mxu1 %v6281_v41 }
  0xcb   : > { %3935 = vmatprep.mubr.f32.mxu1 %v4652_v17 }
  0xcc   : > { %3780 = vmatmul.mubr.f32.vlgmr.msra.gmra.mrb[0].mxu0 %v4661_v20 }
  0xcd   : > { %3804 = vmatpush3.msra.mxu0 %v4631_v9  ;;  %3782 = vmatprep.mubr.f32.mxu0 %v4718_v49  ;;  %v6283_v9 = vld [vmem:[#allocation45_spill] sm:$0xff] }
  0xce   : > { %3936 = vmatmul.mubr.f32.vlgmr.msra.gmra.mrb[0].mxu1 %v4678_v27 }
  0xcf   : > { %3960 = vmatpush3.msra.mxu1 %v4623_v6  ;;  %3938 = vmatprep.mubr.f32.mxu1 %v4729_v53  ;;  %v6282_v6 = vld [vmem:[#allocation50_spill] sm:$0xff] }
  0xd0   : > { %3783 = vmatmul.mubr.f32.gmra.mrb[2].mxu0 %v4738_v58 }
  0xd1   : > { %3785 = vmatprep.mubr.f32.mxu0 %v4761_v5 }
  0xd2   : > { %3939 = vmatmul.mubr.f32.gmra.mrb[2].mxu1 %v4740_v59 }
  0xd3   : > { %3941 = vmatprep.mubr.f32.mxu1 %v4765_v11 }
  0xd4   : > { %3786 = vmatmul.mubr.f32.gmra.mrb[4].mxu0 %v4767_v15 }
  0xd5   : > { %3788 = vmatprep.mubr.f32.mxu0 %v4827_v46 }
  0xd6   : > { %3942 = vmatmul.mubr.f32.gmra.mrb[4].mxu1 %v4789_v40 }
  0xd7   : > { %3944 = vmatprep.mubr.f32.mxu1 %v4847_v37 }
  0xd8   : > { %3789 = vmatmul.mubr.f32.gmra.mrb[6].mxu0 %v4849_v25 }
  0xd9   : > { %3791 = vmatprep.mubr.f32.mxu0 %v4862_v10 }
  0xda   : > { %3945 = vmatmul.mubr.f32.gmra.mrb[6].mxu1 %v4851_v13 }
  0xdb   : > { %3947 = vmatprep.mubr.f32.mxu1 %v4875_v32 }
  0xdc   : > { %3792 = vmatmul.mubr.f32.gmra.mrb[8].mxu0 %v4897_v4 }
  0xdd   : > { %3794 = vmatprep.mubr.f32.mxu0 %v6282_v6 }
  0xde   : > { %3948 = vmatmul.mubr.f32.gmra.mrb[8].mxu1 %v6283_v9 }
  0xdf   : > { %3950 = vmatprep.mubr.f32.mxu1 %v6284_v12 }
  0xe0   : > { %3795 = vmatmul.mubr.f32.gmra.mrb[10].mxu0 %v6285_v35 }
  0xe1   : > { %3797 = vmatprep.mubr.f32.mxu0 %v6286_v56 }
  0xe2   : > { %3951 = vmatmul.mubr.f32.gmra.mrb[10].mxu1 %v6287_v19 }
  0xe3   : > { %3953 = vmatprep.mubr.f32.mxu1 %v6288_v48 }
  0xe4   : > { %3798 = vmatmul.mubr.f32.gmra.mrb[12].mxu0 %v6289_v31 }
  0xe5   : > { %3800 = vmatprep.mubr.f32.mxu0 %v6290_v50 }
  0xe6   : > { %3954 = vmatmul.mubr.f32.gmra.mrb[12].mxu1 %v6291_v23 }
  0xe7   : > { %3956 = vmatprep.mubr.f32.mxu1 %v6292_v60 }
  0xe8   : > { %3801 = vmatmul.mubr.f32.gmra.mrb[14].mxu0 %v6293_v51 }
  0xe9   : > { %3805 = vmatprep.mubr.f32.mxu0 %v4643_v14  ;;  %v4365_v14 = vld [vmem:[%s4612_s25] sm:$0xff] }
  0xea   : > { %3957 = vmatmul.mubr.f32.gmra.mrb[14].mxu1 %v6294_v33 }
  0xeb   : > { %3961 = vmatprep.mubr.f32.mxu1 %v4652_v17  ;;  %v3035_v17 = vmul.f32 %v4365_v14, %v4365_v14 }
  0xec   : > { %3806 = vmatmul.mubr.f32.vlgmr.msra.gmra.mrb[0].mxu0 %v4661_v20 }
  0xed   : > { %3808 = vmatprep.mubr.f32.mxu0 %v4718_v49  ;;  %v3036_v20 = vrot.slane %v3035_v17, 4 }
  0xee   : > { %3962 = vmatmul.mubr.f32.vlgmr.msra.gmra.mrb[0].mxu1 %v4678_v27 }
  0xef   : > { %3964 = vmatprep.mubr.f32.mxu1 %v4729_v53  ;;  %v3037_v49 = vadd.f32 %v3036_v20, %v3035_v17 }
  0xf0   : > { %3809 = vmatmul.mubr.f32.gmra.mrb[2].mxu0 %v4738_v58  ;;  %v6295_v58 = vld [vmem:[#allocation16_spill] sm:$0xff] }
  0xf1   : > { %3811 = vmatprep.mubr.f32.mxu0 %v4761_v5 }
  0xf2   : > { %3965 = vmatmul.mubr.f32.gmra.mrb[2].mxu1 %v4740_v59  ;;  %v5403_v27 = vpop.xlane.xlu0 %2685  ;;  %v2846_v59 = vrot.slane %v6295_v58, 4 }
  0xf3   : > { %3967 = vmatprep.mubr.f32.mxu1 %v4765_v11  ;;  %vm2734_vm7 = vcmp.eq.f32.partialorder %v5403_v27, inf  ;;  %vm2736_vm8 = vcmp.eq.f32.partialorder %v5403_v27, 0.0  ;;  %v2737_v63 = vand.u32 2147483648, %v5403_v27 }
  0xf4   : > { %3812 = vmatmul.mubr.f32.gmra.mrb[4].mxu0 %v4767_v15  ;;  %v2847_v11 = vadd.f32 %v2846_v59, %v6295_v58 }
  0xf5   : > { %3814 = vmatprep.mubr.f32.mxu0 %v4827_v46 }
  0xf6   : > { %3968 = vmatmul.mubr.f32.gmra.mrb[4].mxu1 %v4789_v40 }
  0xf7   : > { %3970 = vmatprep.mubr.f32.mxu1 %v4847_v37  ;;  %v5408_v5 = vpop.xlane.xlu0 %2688  ;;  %v2848_v37 = vrot.slane %v2847_v11, 2 }
  0xf8   : > { %3815 = vmatmul.mubr.f32.gmra.mrb[6].mxu0 %v4849_v25  ;;  %vm2741_vm11 = vcmp.eq.f32.partialorder %v5408_v5, inf  ;;  %vm2743_vm12 = vcmp.eq.f32.partialorder %v5408_v5, 0.0  ;;  %v2744_v29 = vand.u32 2147483648, %v5408_v5 }
  0xf9   : > { %3817 = vmatprep.mubr.f32.mxu0 %v4862_v10  ;;  %v2849_v36 = vadd.f32 %v2848_v37, %v2847_v11 }
  0xfa   : > { %3971 = vmatmul.mubr.f32.gmra.mrb[6].mxu1 %v4851_v13  ;;  %v5398_v13 = vpop.xlane.xlu1 %2691 }
  0xfb   : > { %3973 = vmatprep.mubr.f32.mxu1 %v4875_v32  ;;  %v2850_v52 = vrot.slane %v2849_v36, 1  ;;  %vm2748_vm5 = vcmp.eq.f32.partialorder %v5398_v13, inf  ;;  %vm2750_vm6 = vcmp.eq.f32.partialorder %v5398_v13, 0.0  ;;  %v2751_v1 = vand.u32 2147483648, %v5398_v13 }
  0xfc   : > { %3818 = vmatmul.mubr.f32.gmra.mrb[8].mxu0 %v4897_v4  ;;  %v3038_v4 = vrot.slane %v3037_v49, 2 }
  0xfd   : > { %3820 = vmatprep.mubr.f32.mxu0 %v6282_v6  ;;  %v5423_v57 = vadd.f32 %v2850_v52, %v2849_v36 }
  0xfe   : > { %3974 = vmatmul.mubr.f32.gmra.mrb[8].mxu1 %v6283_v9  ;;  %v5401_v25 = vpop.xlane.xlu1 %2694  ;;  %v3039_v15 = vadd.f32 %v3038_v4, %v3037_v49 }
  0xff   : > { %3976 = vmatprep.mubr.f32.mxu1 %v6284_v12  ;;  %v5413_v46 = vpop.xlane.xlu0 %2697  ;;  %vm2755_vm9 = vcmp.eq.f32.partialorder %v5401_v25, inf  ;;  %vm2757_vm10 = vcmp.eq.f32.partialorder %v5401_v25, 0.0  ;;  %v2758_v24 = vand.u32 2147483648, %v5401_v25  ;;  %vm2854_vm14 = vcmp.eq.f32.partialorder %v5423_v57, inf }
 0x100   : > { %3821 = vmatmul.mubr.f32.gmra.mrb[10].mxu0 %v6285_v35  ;;  %v3040_v10 = vrot.slane %v3039_v15, 1  ;;  %vm2762_vm0 = vcmp.eq.f32.partialorder %v5413_v46, inf  ;;  %vm2764_vm1 = vcmp.eq.f32.partialorder %v5413_v46, 0.0  ;;  %vm2856_vm2 = vcmp.eq.f32.partialorder %v5423_v57, 0.0 }
 0x101   : > { %3823 = vmatprep.mubr.f32.mxu0 %v6286_v56 }
 0x102   : > { %3977 = vmatmul.mubr.f32.gmra.mrb[10].mxu1 %v6287_v19  ;;  %v5405_v53 = vpop.xlane.xlu1 %2700  ;;  %v3041_v3 = vadd.f32 %v3040_v10, %v3039_v15 }
 0x103   : > { %3979 = vmatprep.mubr.f32.mxu1 %v6288_v48  ;;  %v5417_v2 = vpop.xlane.xlu0 %2703  ;;  %vm2769_vm13 = vcmp.eq.f32.partialorder %v5405_v53, inf  ;;  %vm2771_vm15 = vcmp.eq.f32.partialorder %v5405_v53, 0.0  ;;  %v2772_v9 = vand.u32 2147483648, %v5405_v53  ;;  %v2857_v48 = vand.u32 2147483648, %v5423_v57 }
 0x104   : > { %3824 = vmatmul.mubr.f32.gmra.mrb[12].mxu0 %v6289_v31  ;;  %4233 = vrsqrt.f32 %v3041_v3  ;;  %vm3044_vm3 = vcmp.eq.f32.partialorder %v3041_v3, inf  ;;  %v3047_v44 = vand.u32 2147483648, %v3041_v3  ;;  %vm3046_vm4 = vcmp.eq.f32.partialorder %v3041_v3, 0.0 }
 0x105   : > { %3826 = vmatprep.mubr.f32.mxu0 %v6290_v50  ;;  %4235 = vrsqrt.f32 %v5423_v57  ;;  %v2779_v11 = vand.u32 2147483648, %v5417_v2 }
 0x106   : > { %3980 = vmatmul.mubr.f32.gmra.mrb[12].mxu1 %v6291_v23  ;;  %v5411_v40 = vpop.xlane.xlu1 %2706  ;;  %4237 = vrsqrt.f32 %v5408_v5 }
 0x107   : > { %3982 = vmatprep.mubr.f32.mxu1 %v6292_v60  ;;  %v5421_v0 = vpop.xlane.xlu0 %2709  ;;  %4239 = vrsqrt.f32 %v5403_v27  ;;  %v2786_v49 = vand.u32 2147483648, %v5411_v40 }
 0x108   : > { %3827 = vmatmul.mubr.f32.gmra.mrb[14].mxu0 %v6293_v51  ;;  %4241 = vrsqrt.f32 %v5398_v13 }
 0x109   : > { %4243 = vrsqrt.f32 %v5401_v25 }
 0x10a   : > { %3983 = vmatmul.mubr.f32.gmra.mrb[14].mxu1 %v6294_v33  ;;  %v5415_v32 = vpop.xlane.xlu1 %2712  ;;  %4245 = vrsqrt.f32 %v5405_v53  ;;  %v2765_v33 = vand.u32 2147483648, %v5413_v46 }
 0x10b   : > { %v5427_v47 = vpop.xlane.xlu0 %2715  ;;  %4247 = vrsqrt.f32 %v5413_v46 }
 0x10c   : > { %4249 = vrsqrt.f32 %v5411_v40 }
 0x10d   : > { %4251 = vrsqrt.f32 %v5417_v2 }
 0x10e   : > { %v5419_v26 = vpop.xlane.xlu1 %2718  ;;  %v4234_v7 = vpop.eup %4233  ;;  %4253 = vrsqrt.f32 %v5415_v32 }
 0x10f   : > { %v3043_v30 = vmul.f32 %v4234_v7, %v3041_v3  ;;  %v5436_v22 = vpop.xlane.xlu0 %2721  ;;  %v4236_v18 = vpop.eup %4235  ;;  %4255 = vrsqrt.f32 %v5421_v0  ;;  %v2793_v7 = vand.u32 2147483648, %v5421_v0 }
 0x110   : > { %v4238_v38 = vpop.eup %4237  ;;  %v2853_v21 = vmul.f32 %v4236_v18, %v5423_v57  ;;  %4257 = vrsqrt.f32 %v5419_v26 }
 0x111   : > { %v3045_v42 = vsel %vm3044_vm3, %v3041_v3, %v3043_v30  ;;  %v4240_v54 = vpop.eup %4239  ;;  %v2740_v34 = vmul.f32 %v4238_v38, %v5408_v5  ;;  %vm2783_vm3 = vcmp.eq.f32.partialorder %v5411_v40, inf  ;;  %4259 = vrsqrt.f32 %v5427_v47 }
 0x112   : > { %v5425_v39 = vpop.xlane.xlu1 %2724  ;;  %v5448_v43 = vsel %vm3046_vm4, %v3047_v44, %v3045_v42  ;;  %v4242_v61 = vpop.eup %4241  ;;  %v2733_v45 = vmul.f32 %v4240_v54, %v5403_v27  ;;  %v2855_v50 = vsel %vm2854_vm14, %v5423_v57, %v2853_v21  ;;  %vm2785_vm4 = vcmp.eq.f32.partialorder %v5411_v40, 0.0 }
 0x113   : > { %v5446_v62 = vpop.xlane.xlu0 %2727  ;;  %v4244_v16 = vpop.eup %4243  ;;  %v2747_v28 = vmul.f32 %v4242_v61, %v5398_v13  ;;  %v2742_v56 = vsel %vm2741_vm11, %v5408_v5, %v2740_v34  ;;  %v5501_v58 = vsel %vm2856_vm2, %v2857_v48, %v2855_v50  ;;  %4261 = vrsqrt.f32 %v5425_v39 }
 0x114   : > { %v4246_v41 = vpop.eup %4245  ;;  %v2754_v6 = vmul.f32 %v4244_v16, %v5401_v25  ;;  %v2735_v31 = vsel %vm2734_vm7, %v5403_v27, %v2733_v45  ;;  %v2745_v20 = vsel %vm2743_vm12, %v2744_v29, %v2742_v56  ;;  %vm2778_vm7 = vcmp.eq.f32.partialorder %v5417_v2, 0.0 }
 0x115   : > { %v4248_v35 = vpop.eup %4247  ;;  %v2749_v60 = vsel %vm2748_vm5, %v5398_v13, %v2747_v28  ;;  %v2768_v51 = vmul.f32 %v4246_v41, %v5405_v53  ;;  %v2738_v59 = vsel %vm2736_vm8, %v2737_v63, %v2735_v31  ;;  %vm2776_vm5 = vcmp.eq.f32.partialorder %v5417_v2, inf }
 0x116   : > { %v5434_v8 = vpop.xlane.xlu1 %2730  ;;  %v4250_v23 = vpop.eup %4249  ;;  %v2756_v14 = vsel %vm2755_vm9, %v5401_v25, %v2754_v6  ;;  %v2761_v17 = vmul.f32 %v4248_v35, %v5413_v46  ;;  %v2752_v5 = vsel %vm2750_vm6, %v2751_v1, %v2749_v60  ;;  %v3050_v10 = vmul.f32 %v5501_v58, %v2745_v20 }
 0x117   : > { %v5477_v19 = vpop.xlane.xlu0 %2876  ;;  %v2782_v4 = vmul.f32 %v4250_v23, %v5411_v40  ;;  %v2770_v37 = vsel %vm2769_vm13, %v5405_v53, %v2768_v51  ;;  %v2759_v36 = vsel %vm2757_vm10, %v2758_v24, %v2756_v14  ;;  %v4252_v3 = vpop.eup %4251  ;;  %vm2797_vm6 = vcmp.eq.f32.partialorder %v5415_v32, inf }
 0x118   : > { %v2763_v13 = vsel %vm2762_vm0, %v5413_v46, %v2761_v17  ;;  %v3049_v52 = vmul.f32 %v5501_v58, %v2738_v59  ;;  %v2800_v57 = vand.u32 2147483648, %v5415_v32  ;;  %vm2790_vm8 = vcmp.eq.f32.partialorder %v5421_v0, inf  ;;  %v4254_v25 = vpop.eup %4253 }
 0x119   : > { %4263 = vrsqrt.f32 %v5436_v22  ;;  %v2784_v30 = vsel %vm2783_vm3, %v5411_v40, %v2782_v4  ;;  %v3052_v44 = vmul.f32 %v5501_v58, %v2759_v36  ;;  %v2773_v42 = vsel %vm2771_vm15, %v2772_v9, %v2770_v37  ;;  %v4256_v1 = vpop.eup %4255 }
 0x11a   : > { %v5441_v55 = vpop.xlane.xlu1 %2879  ;;  %v2775_v18 = vmul.f32 %v4252_v3, %v5417_v2  ;;  %vm2799_vm9 = vcmp.eq.f32.partialorder %v5415_v32, 0.0  ;;  %v3066_v38 = vadd.f32 1e-06, %v3050_v10  ;;  %v2766_v54 = vsel %vm2764_vm1, %v2765_v33, %v2763_v13  ;;  %v4258_v41 = vpop.eup %4257 }
 0x11b   : > { %4265 = vrsqrt.f32 %v5441_v55  ;;  %vm2811_vm10 = vcmp.eq.f32.partialorder %v5419_v26, inf  ;;  %v2814_v61 = vand.u32 2147483648, %v5419_v26  ;;  %v3065_v16 = vadd.f32 1e-06, %v3049_v52  ;;  %v4260_v31 = vpop.eup %4259 }
 0x11c   : > { %4267 = vrsqrt.f32 %v5434_v8  ;;  %v3051_v53 = vmul.f32 %v5501_v58, %v2752_v5  ;;  %v2796_v24 = vmul.f32 %v4254_v25, %v5415_v32  ;;  %vm2792_vm11 = vcmp.eq.f32.partialorder %v5421_v0, 0.0 }
 0x11d   : > { %vm2804_vm12 = vcmp.eq.f32.partialorder %v5427_v47, inf  ;;  %v2807_v34 = vand.u32 2147483648, %v5427_v47  ;;  %4269 = vrsqrt.f32 %v5446_v62  ;;  %v3054_v45 = vmul.f32 %v5501_v58, %v2773_v42  ;;  %v4262_v60 = vpop.eup %4261 }
 0x11e   : > { %v5470_v12 = vpop.xlane.xlu1 %2885  ;;  %vm2825_vm13 = vcmp.eq.f32.partialorder %v5425_v39, inf  ;;  %v2828_v21 = vand.u32 2147483648, %v5425_v39  ;;  %v3053_v28 = vmul.f32 %v5501_v58, %v2766_v54  ;;  %v2787_v29 = vsel %vm2785_vm4, %v2786_v49, %v2784_v30 }
 0x11f   : > { %v5517_v27 = vpop.xlane.xlu0 %2882  ;;  %v2777_v6 = vsel %vm2776_vm5, %v5417_v2, %v2775_v18  ;;  %v2789_v9 = vmul.f32 %v4256_v1, %v5421_v0  ;;  %4271 = vrcp.f32 %v3066_v38  ;;  %v3068_v35 = vadd.f32 1e-06, %v3052_v44 }
 0x120   : > { %vm2818_vm14 = vcmp.eq.f32.partialorder %v5436_v22, inf  ;;  %v2821_v56 = vand.u32 2147483648, %v5436_v22  ;;  %4273 = vrcp.f32 %v3065_v16  ;;  %v3067_v48 = vadd.f32 1e-06, %v3051_v53 }
 0x121   : > { %v2798_v40 = vsel %vm2797_vm6, %v5415_v32, %v2796_v24  ;;  %vm2839_vm15 = vcmp.eq.f32.partialorder %v5434_v8, inf  ;;  %4275 = vrsqrt.f32 %v5477_v19  ;;  %v3070_v50 = vadd.f32 1e-06, %v3054_v45 }
 0x122   : > { %v5508_v15 = vpop.xlane.xlu1 %2891  ;;  %v3056_v23 = vmul.f32 %v5501_v58, %v2787_v29  ;;  %v2810_v51 = vmul.f32 %v4258_v41, %v5419_v26  ;;  %4277 = vrsqrt.f32 %v5470_v12  ;;  %v3069_v14 = vadd.f32 1e-06, %v3053_v28 }
 0x123   : > { %v5554_v46 = vpop.xlane.xlu0 %2888  ;;  %v2780_v17 = vsel %vm2778_vm7, %v2779_v11, %v2777_v6  ;;  %v4264_v20 = vpop.eup %4263  ;;  %v2791_v49 = vsel %vm2790_vm8, %v5421_v0, %v2789_v9  ;;  %v2842_v59 = vand.u32 2147483648, %v5434_v8  ;;  %vm2832_vm0 = vcmp.eq.f32.partialorder %v5446_v62, inf }
 0x124   : > { %4279 = vrcp.f32 %v3068_v35  ;;  %v2803_v37 = vmul.f32 %v4260_v31, %v5427_v47  ;;  %v2835_v10 = vand.u32 2147483648, %v5446_v62  ;;  %vm2932_vm1 = vcmp.eq.f32.partialorder %v5441_v55, inf }
 0x125   : > { %v4266_v5 = vpop.eup %4265  ;;  %4281 = vrcp.f32 %v3067_v48  ;;  %vm2813_vm2 = vcmp.eq.f32.partialorder %v5419_v26, 0.0  ;;  %v2824_v11 = vmul.f32 %v4262_v60, %v5425_v39  ;;  %v3072_v36 = vadd.f32 1e-06, %v3056_v23 }
 0x126   : > { %v5546_v63 = vpop.xlane.xlu1 %2897  ;;  %v4268_v2 = vpop.eup %4267  ;;  %4283 = vrcp.f32 %v3070_v50  ;;  %v3055_v3 = vmul.f32 %v5501_v58, %v2780_v17  ;;  %v2812_v13 = vsel %vm2811_vm10, %v5419_v26, %v2810_v51  ;;  %vm2806_vm3 = vcmp.eq.f32.partialorder %v5427_v47, 0.0 }
 0x127   : > { %v5587_v4 = vpop.xlane.xlu0 %2894  ;;  %v2817_v52 = vmul.f32 %v4264_v20, %v5436_v22  ;;  %4285 = vrcp.f32 %v3069_v14  ;;  %v2801_v25 = vsel %vm2799_vm9, %v2800_v57, %v2798_v40  ;;  %v4270_v30 = vpop.eup %4269  ;;  %v2931_v44 = vmul.f32 %v4266_v5, %v5441_v55 }
 0x128   : > { %vm2934_vm4 = vcmp.eq.f32.partialorder %v5441_v55, 0.0  ;;  %v2935_v42 = vand.u32 2147483648, %v5441_v55  ;;  %4287 = vrsqrt.f32 %v5517_v27  ;;  %v2805_v18 = vsel %vm2804_vm12, %v5427_v47, %v2803_v37 }
 0x129   : > { %v2838_v38 = vmul.f32 %v4268_v2, %v5434_v8  ;;  %4289 = vrsqrt.f32 %v5508_v15  ;;  %v2794_v32 = vsel %vm2792_vm11, %v2793_v7, %v2791_v49  ;;  %v5619_v57 = vpop.eup %4271  ;;  %v5624_v1 = vsel %vm2825_vm13, %v5425_v39, %v2824_v11 }
 0x12a   : > { %v5576_v33 = vpop.xlane.xlu1 %2903  ;;  %vm2827_vm5 = vcmp.eq.f32.partialorder %v5425_v39, 0.0  ;;  %4291 = vrcp.f32 %v3072_v36  ;;  %v3071_v53 = vadd.f32 1e-06, %v3055_v3  ;;  %v3058_v24 = vmul.f32 %v5501_v58, %v2801_v25  ;;  %v5630_v45 = vpop.eup %4273 }
 0x12b   : > { %v5627_v16 = vpop.xlane.xlu0 %2900  ;;  %v5635_v0 = vsel %vm2818_vm14, %v5436_v22, %v2817_v52  ;;  %v2831_v7 = vmul.f32 %v4270_v30, %v5446_v62  ;;  %vm2925_vm7 = vcmp.eq.f32.partialorder %v5477_v19, inf  ;;  %4293 = vrsqrt.f32 %v5554_v46  ;;  %v4276_v28 = vpop.eup %4275 }
 0x12c   : > { %v2933_v29 = vsel %vm2932_vm1, %v5441_v55, %v2931_v44  ;;  %vm2927_vm6 = vcmp.eq.f32.partialorder %v5477_v19, 0.0  ;;  %v2928_v41 = vand.u32 2147483648, %v5477_v19  ;;  %4295 = vrsqrt.f32 %v5546_v63  ;;  %v4278_v9 = vpop.eup %4277 }
 0x12d   : > { %v3057_v6 = vmul.f32 %v5501_v58, %v2794_v32  ;;  %v5650_v35 = vsel %vm2839_vm15, %v5434_v8, %v2838_v38  ;;  %vm2946_vm8 = vcmp.eq.f32.partialorder %v5470_v12, inf  ;;  %vm2948_vm9 = vcmp.eq.f32.partialorder %v5470_v12, 0.0 }
 0x12e   : > { %v5613_v54 = vpop.xlane.xlu1 %2909  ;;  %4297 = vrsqrt.f32 %v5587_v4  ;;  %v5655_v48 = vpop.eup %4279  ;;  %v2949_v31 = vand.u32 2147483648, %v5470_v12  ;;  %vm2939_vm10 = vcmp.eq.f32.partialorder %v5517_v27, inf  ;;  %v3074_v40 = vadd.f32 1e-06, %v3058_v24 }
 0x12f   : > { %4299 = vrsqrt.f32 %v5576_v33  ;;  %v5660_v50 = vpop.eup %4281  ;;  %v5665_v23 = vsel %vm2832_vm0, %v5446_v62, %v2831_v7  ;;  %v2942_v60 = vand.u32 2147483648, %v5517_v27  ;;  %v2936_v14 = vsel %vm2934_vm4, %v2935_v42, %v2933_v29  ;;  %v5677_v5 = vpop.xlane.xlu0 %2906 }
 0x130   : > { %4301 = vrcp.f32 %v3071_v53  ;;  %v5672_v17 = vpop.eup %4283  ;;  %v2924_v20 = vmul.f32 %v4276_v28, %v5477_v19  ;;  %v2945_v49 = vmul.f32 %v4278_v9, %v5470_v12  ;;  %v3073_v37 = vadd.f32 1e-06, %v3057_v6 }
 0x131   : > { %4303 = vrsqrt.f32 %v5627_v16  ;;  %v5679_v2 = vpop.eup %4285  ;;  %vm2941_vm11 = vcmp.eq.f32.partialorder %v5517_v27, 0.0  ;;  %vm2960_vm12 = vcmp.eq.f32.partialorder %v5508_v15, inf  ;;  %v2963_v55 = vand.u32 2147483648, %v5508_v15 }
 0x132   : > { %v5668_v51 = vpop.xlane.xlu1 %2915  ;;  %4305 = vrsqrt.f32 %v5613_v54  ;;  %v2815_v11 = vsel %vm2813_vm2, %v2814_v61, %v2812_v13  ;;  %v4288_v36 = vpop.eup %4287  ;;  %vm2953_vm13 = vcmp.eq.f32.partialorder %v5554_v46, inf  ;;  %v2956_v3 = vand.u32 2147483648, %v5554_v46 }
 0x133   : > { %4307 = vrcp.f32 %v3074_v40  ;;  %v2808_v52 = vsel %vm2806_vm3, %v2807_v34, %v2805_v18  ;;  %v4290_v25 = vpop.eup %4289  ;;  %vm2962_vm14 = vcmp.eq.f32.partialorder %v5508_v15, 0.0  ;;  %vm2974_vm15 = vcmp.eq.f32.partialorder %v5546_v63, inf }
 0x134   : > { %v2977_v30 = vand.u32 2147483648, %v5546_v63  ;;  %4309 = vrsqrt.f32 %v5677_v5  ;;  %v3114_v26 = vmul.f32 %v5448_v43, %v2936_v14  ;;  %v5700_v61 = vpop.eup %4291  ;;  %v2926_v13 = vsel %vm2925_vm7, %v5477_v19, %v2924_v20 }
 0x135   : > { %v2947_v47 = vsel %vm2946_vm8, %v5470_v12, %v2945_v49  ;;  %vm2955_vm0 = vcmp.eq.f32.partialorder %v5554_v46, 0.0  ;;  %4311 = vrcp.f32 %v3073_v37  ;;  %v3060_v34 = vmul.f32 %v5501_v58, %v2815_v11  ;;  %v4294_v44 = vpop.eup %4293 }
 0x136   : > { %v2938_v42 = vmul.f32 %v4288_v36, %v5517_v27  ;;  %vm2976_vm1 = vcmp.eq.f32.partialorder %v5546_v63, 0.0  ;;  %vm2967_vm2 = vcmp.eq.f32.partialorder %v5587_v4, inf  ;;  %v5713_v18 = vpop.xlane.xlu1 %2921  ;;  %v5716_v38 = vmul.f32 %v5501_v58, %v2808_v52  ;;  %v4296_v53 = vpop.eup %4295 }
 0x137   : > { %v5723_v32 = vsel %vm2827_vm5, %v2828_v21, %v5624_v1  ;;  %v2959_v24 = vmul.f32 %v4290_v25, %v5508_v15  ;;  %vm2969_vm3 = vcmp.eq.f32.partialorder %v5587_v4, 0.0  ;;  %v2970_v7 = vand.u32 2147483648, %v5587_v4 }
 0x138   : > { %vm2988_vm4 = vcmp.eq.f32.partialorder %v5576_v33, inf  ;;  %v2991_v28 = vand.u32 2147483648, %v5576_v33  ;;  %v4298_v29 = vpop.eup %4297  ;;  %vm2990_vm7 = vcmp.eq.f32.partialorder %v5576_v33, 0.0  ;;  %4313 = vrsqrt.f32 %v5668_v51 }
 0x139   : > { %v3130_v6 = vadd.f32 1e-06, %v3114_v26  ;;  %v2929_v39 = vsel %vm2927_vm6, %v2928_v41, %v2926_v13  ;;  %v2950_v21 = vsel %vm2948_vm9, %v2949_v31, %v2947_v47  ;;  %v4300_v1 = vpop.eup %4299  ;;  %v2952_v9 = vmul.f32 %v4294_v44, %v5554_v46  ;;  %v5751_v41 = vpop.xlane.xlu0 %2912 }
 0x13a   : > { %vm2981_vm5 = vcmp.eq.f32.partialorder %v5627_v16, inf  ;;  %4315 = vrsqrt.f32 %v5713_v18  ;;  %v5741_v40 = vadd.f32 1e-06, %v3060_v34  ;;  %v5743_v14 = vpop.eup %4301  ;;  %v2940_v20 = vsel %vm2939_vm10, %v5517_v27, %v2938_v42 }
 0x13b   : > { %v2973_v19 = vmul.f32 %v4296_v53, %v5546_v63  ;;  %vm2983_vm6 = vcmp.eq.f32.partialorder %v5627_v16, 0.0  ;;  %v2984_v12 = vand.u32 2147483648, %v5627_v16  ;;  %v4304_v31 = vpop.eup %4303  ;;  %v2961_v49 = vsel %vm2960_vm12, %v5508_v15, %v2959_v24 }
 0x13c   : > { %v2966_v37 = vmul.f32 %v4298_v29, %v5587_v4  ;;  %vm3002_vm8 = vcmp.eq.f32.partialorder %v5613_v54, inf  ;;  %vm3004_vm9 = vcmp.eq.f32.partialorder %v5613_v54, 0.0  ;;  %v4306_v11 = vpop.eup %4305  ;;  %v2987_v36 = vmul.f32 %v4300_v1, %v5576_v33 }
 0x13d   : > { %v3005_v52 = vand.u32 2147483648, %v5613_v54  ;;  %4317 = vrcp.f32 %v3130_v6  ;;  %v3113_v25 = vmul.f32 %v5448_v43, %v2929_v39  ;;  %v5762_v26 = vpop.eup %4307  ;;  %v2954_v13 = vsel %vm2953_vm13, %v5554_v46, %v2952_v9 }
 0x13e   : > { %4319 = vrsqrt.f32 %v5751_v41  ;;  %v3116_v47 = vmul.f32 %v5448_v43, %v2950_v21  ;;  %v2943_v34 = vsel %vm2941_vm11, %v2942_v60, %v2940_v20  ;;  %v4310_v44 = vpop.eup %4309  ;;  %v2975_v42 = vsel %vm2974_vm15, %v5546_v63, %v2973_v19 }
 0x13f   : > { %v2980_v53 = vmul.f32 %v4304_v31, %v5627_v16  ;;  %vm2995_vm10 = vcmp.eq.f32.partialorder %v5677_v5, inf  ;;  %vm2997_vm12 = vcmp.eq.f32.partialorder %v5677_v5, 0.0  ;;  %v5779_v24 = vpop.eup %4311  ;;  %v2968_v29 = vsel %vm2967_vm2, %v5587_v4, %v2966_v37 }
 0x140   : > { %v3001_v27 = vmul.f32 %v4306_v11, %v5613_v54  ;;  %v2998_v60 = vand.u32 2147483648, %v5677_v5  ;;  %v2964_v6 = vsel %vm2962_vm14, %v2963_v55, %v2961_v49  ;;  %v2989_v39 = vsel %vm2988_vm4, %v5576_v33, %v2987_v36  ;;  %v5802_v55 = vpop.xlane.xlu0 %2918 }
 0x141   : > { %vm3016_vm11 = vcmp.eq.f32.partialorder %v5668_v51, inf  ;;  %v3115_v21 = vmul.f32 %v5448_v43, %v2943_v34  ;;  %v2957_v1 = vsel %vm2955_vm0, %v2956_v3, %v2954_v13  ;;  %v2994_v9 = vmul.f32 %v4310_v44, %v5677_v5 }
 0x142   : > { %vm3018_vm13 = vcmp.eq.f32.partialorder %v5668_v51, 0.0  ;;  %v3019_v15 = vand.u32 2147483648, %v5668_v51  ;;  %v3129_v20 = vadd.f32 1e-06, %v3113_v25  ;;  %v2978_v19 = vsel %vm2976_vm1, %v2977_v30, %v2975_v42  ;;  %v4314_v31 = vpop.eup %4313 }
 0x143   : > { %v2982_v46 = vsel %vm2981_vm5, %v5627_v16, %v2980_v53  ;;  %v3132_v3 = vadd.f32 1e-06, %v3116_v47  ;;  %v3118_v49 = vmul.f32 %v5448_v43, %v2964_v6  ;;  %v2971_v37 = vsel %vm2969_vm3, %v2970_v7, %v2968_v29 }
 0x144   : > { %v4316_v11 = vpop.eup %4315  ;;  %v3003_v36 = vsel %vm3002_vm8, %v5613_v54, %v3001_v27  ;;  %vm3009_vm14 = vcmp.eq.f32.partialorder %v5751_v41, inf  ;;  %v3117_v63 = vmul.f32 %v5448_v43, %v2957_v1  ;;  %v2992_v30 = vsel %vm2990_vm7, %v2991_v28, %v2989_v39 }
 0x145   : > { %vm3030_vm15 = vcmp.eq.f32.partialorder %v5713_v18, inf  ;;  %4321 = vrsqrt.f32 %v5802_v55  ;;  %v3131_v4 = vadd.f32 1e-06, %v3115_v21  ;;  %v3120_v7 = vmul.f32 %v5448_v43, %v2978_v19 }
 0x146   : > { %v2996_v25 = vsel %vm2995_vm10, %v5677_v5, %v2994_v9  ;;  %v3015_v13 = vmul.f32 %v4314_v31, %v5668_v51  ;;  %v3119_v47 = vmul.f32 %v5448_v43, %v2971_v37  ;;  %v2985_v34 = vsel %vm2983_vm6, %v2984_v12, %v2982_v46 }
 0x147   : > { %v4318_v33 = vpop.eup %4317  ;;  %vm2820_vm0 = vcmp.eq.f32.partialorder %v5436_v22, 0.0  ;;  %v3029_v28 = vmul.f32 %v4316_v11, %v5713_v18  ;;  %v3134_v44 = vadd.f32 1e-06, %v3118_v49  ;;  %v3122_v42 = vmul.f32 %v5448_v43, %v2992_v30 }
 0x148   : > { %v3006_v53 = vsel %vm3004_vm9, %v3005_v52, %v3003_v36  ;;  %v4320_v29 = vpop.eup %4319  ;;  %vm3032_vm1 = vcmp.eq.f32.partialorder %v5713_v18, 0.0  ;;  %v3033_v27 = vand.u32 2147483648, %v5713_v18  ;;  %4323 = vrcp.f32 %v3129_v20 }
 0x149   : > { %v3133_v6 = vadd.f32 1e-06, %v3117_v63  ;;  %4325 = vrcp.f32 %v3132_v3  ;;  %v3136_v16 = vadd.f32 1e-06, %v3120_v7  ;;  %v3121_v12 = vmul.f32 %v5448_v43, %v2985_v34 }
 0x14a   : > { %v2999_v39 = vsel %vm2997_vm12, %v2998_v60, %v2996_v25  ;;  %vm2841_vm2 = vcmp.eq.f32.partialorder %v5434_v8, 0.0  ;;  %v3017_v54 = vsel %vm3016_vm11, %v5668_v51, %v3015_v13  ;;  %4327 = vrcp.f32 %v3131_v4 }
 0x14b   : > { %v3135_v52 = vadd.f32 1e-06, %v3119_v47  ;;  %v3124_v21 = vmul.f32 %v5448_v43, %v3006_v53  ;;  %v3008_v1 = vmul.f32 %v4320_v29, %v5751_v41  ;;  %v3031_v9 = vsel %vm3030_vm15, %v5713_v18, %v3029_v28 }
 0x14c   : > { %4329 = vrcp.f32 %v3134_v44  ;;  %v3138_v20 = vadd.f32 1e-06, %v3122_v42  ;;  %vm2834_vm3 = vcmp.eq.f32.partialorder %v5446_v62, 0.0  ;;  %vm3011_vm4 = vcmp.eq.f32.partialorder %v5751_v41, 0.0 }
 0x14d   : > { %v3012_v5 = vand.u32 2147483648, %v5751_v41  ;;  %4331 = vrcp.f32 %v3133_v6  ;;  %v3123_v60 = vmul.f32 %v5448_v43, %v2999_v39  ;;  %vm3023_vm7 = vcmp.eq.f32.partialorder %v5802_v55, inf }
 0x14e   : > { %4333 = vrcp.f32 %v3136_v16  ;;  %v3137_v19 = vadd.f32 1e-06, %v3121_v12  ;;  %v3020_v31 = vsel %vm3018_vm13, %v3019_v15, %v3017_v54  ;;  %v3034_v46 = vsel %vm3032_vm1, %v3033_v27, %v3031_v9  ;;  %v3194_v12 = vld [vmem:[#allocation2 + $0x8] sm:$0xff] }
 0x14f   : > { %vm3025_vm5 = vcmp.eq.f32.partialorder %v5802_v55, 0.0  ;;  %4335 = vrcp.f32 %v3135_v52  ;;  %v3140_v3 = vadd.f32 1e-06, %v3124_v21  ;;  %v4322_v49 = vpop.eup %4321  ;;  %v3010_v37 = vsel %vm3009_vm14, %v5751_v41, %v3008_v1  ;;  %v3193_v21 = vld [vmem:[#allocation2] sm:$0xff] }
 0x150   : > { %4337 = vrcp.f32 %v3138_v20  ;;  %v3075_v36 = vadd.f32 1e-06, %v5716_v38  ;;  %v3062_v51 = vmul.f32 %v5501_v58, %v5723_v32  ;;  %v3139_v63 = vadd.f32 1e-06, %v3123_v60 }
 0x151   : > { %4339 = vrcp.f32 %v5741_v40  ;;  %v3126_v30 = vmul.f32 %v5448_v43, %v3020_v31  ;;  %v5872_v4 = vmul.f32 %v5448_v43, %v3034_v46  ;;  %v3026_v7 = vand.u32 2147483648, %v5802_v55 }
 0x152   : > { %4341 = vrcp.f32 %v3137_v19  ;;  %v4324_v38 = vpop.eup %4323  ;;  %v3022_v32 = vmul.f32 %v4322_v49, %v5802_v55  ;;  %v2822_v40 = vsel %vm2820_vm0, %v2821_v56, %v5635_v0  ;;  %v3078_v42 = vadd.f32 1e-06, %v3062_v51  ;;  %v3196_v51 = vld [vmem:[#allocation2 + $0x18] sm:$0xff] }
 0x153   : > { %4343 = vrcp.f32 %v3140_v3  ;;  %v4326_v34 = vpop.eup %4325  ;;  %v3142_v6 = vadd.f32 1e-06, %v3126_v30  ;;  %v3061_v0 = vmul.f32 %v5501_v58, %v2822_v40  ;;  %v2843_v41 = vsel %vm2841_vm2, %v2842_v59, %v5650_v35 }
 0x154   : > { %4345 = vrcp.f32 %v3075_v36  ;;  %v4328_v53 = vpop.eup %4327  ;;  %v2836_v8 = vsel %vm2834_vm3, %v2835_v10, %v5665_v23  ;;  %v3064_v49 = vmul.f32 %v5501_v58, %v2843_v41  ;;  %v3144_v41 = vadd.f32 1e-06, %v5872_v4 }
 0x155   : > { %4347 = vrcp.f32 %v3139_v63  ;;  %v3195_v63 = vld [vmem:[#allocation2 + $0x10] sm:$0xff] }
 0x156   : > { %v4330_v16 = vpop.eup %4329  ;;  %4349 = vrcp.f32 %v3078_v42 }
 0x157   : > { %v4332_v54 = vpop.eup %4331  ;;  %4351 = vrcp.f32 %v3142_v6 }
 0x1bf   : > { %v3807_v11 = vpop.f32.mrb[0].mxu0 }
 0x1c0   : > { %v3084_v15 = vmul.f32 %v5619_v57, %v3807_v11  ;;  %v1434_v18 = vpop.f32.mrb[1].mxu0 }
 0x1c1   : > { %v3963_v25 = vpop.f32.mrb[0].mxu1  ;;  %v3082_v13 = vmul.f32 %v5630_v45, %v1434_v18  ;;  %v3013_v45 = vsel %vm3011_vm4, %v3012_v5, %v3010_v37 }
 0x1c2   : > { %v3148_v47 = vmul.f32 %v4318_v33, %v3963_v25  ;;  %v2574_v57 = vpop.f32.mrb[1].mxu1  ;;  %v3125_v20 = vmul.f32 %v5448_v43, %v3013_v45  ;;  %v3077_v25 = vadd.f32 1e-06, %v3061_v0 }
 0x1c3   : > { %v3146_v28 = vmul.f32 %v4324_v38, %v2574_v57  ;;  %v3810_v44 = vpop.f32.mrb[2].mxu0 }
 0x1c4   : > { %v3178_v29 = vsub.f32 %v3084_v15, %v3148_v47  ;;  %v3088_v33 = vmul.f32 %v5655_v48, %v3810_v44  ;;  %v1446_v27 = vpop.f32.mrb[3].mxu0  ;;  %v3024_v48 = vsel %vm3023_vm7, %v5802_v55, %v3022_v32  ;;  %v3141_v47 = vadd.f32 1e-06, %v3125_v20  ;;  %v3200_v20 = vld [vmem:[#allocation2 + $0x38] sm:$0xff] }
 0x1c5   : > { %v3177_v39 = vsub.f32 %v3082_v13, %v3146_v28  ;;  %v3966_v22 = vpop.f32.mrb[2].mxu1  ;;  %v3086_v56 = vmul.f32 %v5660_v50, %v1446_v27  ;;  %v4334_v50 = vpop.eup %4333  ;;  %v3027_v11 = vsel %vm3025_vm5, %v3026_v7, %v3024_v48  ;;  %v3063_v13 = vmul.f32 %v5501_v58, %v2836_v8  ;;  %v3199_v8 = vld [vmem:[#allocation2 + $0x30] sm:$0xff] }
 0x1c6   : > { %v3210_v52 = vmul.f32 %v3178_v29, %v3178_v29  ;;  %v3152_v1 = vmul.f32 %v4326_v34, %v3966_v22  ;;  %v2586_v9 = vpop.f32.mrb[3].mxu1  ;;  %v4336_v59 = vpop.eup %4335  ;;  %v3080_v27 = vadd.f32 1e-06, %v3064_v49  ;;  %4353 = vrcp.f32 %v3077_v25 }
 0x1c7   : > { %v3209_v5 = vmul.f32 %v3177_v39, %v3177_v39  ;;  %v3150_v60 = vmul.f32 %v4328_v53, %v2586_v9  ;;  %v3813_v19 = vpop.f32.mrb[4].mxu0  ;;  %v5903_v37 = vpop.eup %4337  ;;  %v3198_v53 = vld [vmem:[#allocation2 + $0x28] sm:$0xff]  ;;  %4355 = vrcp.f32 %v3141_v47 }
 0x1c8   : > { %v3226_v35 = vadd.f32 %v3210_v52, %v3194_v12  ;;  %v3180_v31 = vsub.f32 %v3088_v33, %v3152_v1  ;;  %v3092_v46 = vmul.f32 %v5672_v17, %v3813_v19  ;;  %v1458_v3 = vpop.f32.mrb[5].mxu0  ;;  %v5908_v10 = vpop.eup %4339  ;;  %v3197_v12 = vld [vmem:[#allocation2 + $0x20] sm:$0xff]  ;;  %4357 = vrcp.f32 %v3080_v27 }
 0x1c9   : > { %v3225_v36 = vadd.f32 %v3209_v5, %v3193_v21  ;;  %v3179_v15 = vsub.f32 %v3086_v56, %v3150_v60  ;;  %v3969_v18 = vpop.f32.mrb[4].mxu1  ;;  %v3090_v62 = vmul.f32 %v5679_v2, %v1458_v3  ;;  %v4342_v38 = vpop.eup %4341  ;;  %v3127_v2 = vmul.f32 %v5448_v43, %v3027_v11 }
 0x1ca   : > { %3242 = vst [vmem:[#allocation2 + $0x8] sm:$0xff] %v3226_v35  ;;  %v3212_v23 = vmul.f32 %v3180_v31, %v3180_v31  ;;  %v3156_v17 = vmul.f32 %v4330_v16, %v3969_v18  ;;  %v2598_v30 = vpop.f32.mrb[5].mxu1  ;;  %v5911_v57 = vpop.eup %4343  ;;  %v3079_v43 = vadd.f32 1e-06, %v3063_v13 }
 0x1cb   : > { %3241 = vst [vmem:[#allocation2] sm:$0xff] %v3225_v36  ;;  %v3211_v55 = vmul.f32 %v3179_v15, %v3179_v15  ;;  %v3154_v7 = vmul.f32 %v4332_v54, %v2598_v30  ;;  %v3816_v32 = vpop.f32.mrb[6].mxu0  ;;  %v4346_v42 = vpop.eup %4345  ;;  %v3143_v21 = vadd.f32 1e-06, %v3127_v2 }
 0x1cc   : > { %v3228_v40 = vadd.f32 %v3212_v23, %v3196_v51  ;;  %v3182_v34 = vsub.f32 %v3092_v46, %v3156_v17  ;;  %v3096_v28 = vmul.f32 %v5700_v61, %v3816_v32  ;;  %v1470_v44 = vpop.f32.mrb[7].mxu0  ;;  %v4348_v16 = vpop.eup %4347  ;;  %4359 = vrcp.f32 %v3079_v43  ;;  %v3202_v51 = vld [vmem:[#allocation2 + $0x48] sm:$0xff]  ;;  %v3201_v23 = vld [vmem:[#allocation2 + $0x40] sm:$0xff] }
 0x1cd   : > { %v3227_v45 = vadd.f32 %v3211_v55, %v3195_v63  ;;  %v3181_v58 = vsub.f32 %v3090_v62, %v3154_v7  ;;  %v3972_v29 = vpop.f32.mrb[6].mxu1  ;;  %v3094_v33 = vmul.f32 %v5743_v14, %v1470_v44  ;;  %v4350_v1 = vpop.eup %4349  ;;  %4361 = vrcp.f32 %v3144_v41 }
 0x1ce   : > { %3244 = vst [vmem:[#allocation2 + $0x18] sm:$0xff] %v3228_v40  ;;  %v3214_v6 = vmul.f32 %v3182_v34, %v3182_v34  ;;  %v3160_v39 = vmul.f32 %v4334_v50, %v3972_v29  ;;  %v2610_v22 = vpop.f32.mrb[7].mxu1  ;;  %4363 = vrcp.f32 %v3143_v21  ;;  %v3204_v40 = vld [vmem:[#allocation2 + $0x58] sm:$0xff] }
 0x1cf   : > { %3243 = vst [vmem:[#allocation2 + $0x10] sm:$0xff] %v3227_v45  ;;  %v3213_v56 = vmul.f32 %v3181_v58, %v3181_v58  ;;  %v3158_v61 = vmul.f32 %v4336_v59, %v2610_v22  ;;  %v3819_v0 = vpop.f32.mrb[8].mxu0  ;;  %v3203_v45 = vld [vmem:[#allocation2 + $0x50] sm:$0xff] }
 0x1d0   : > { %v3230_v54 = vadd.f32 %v3214_v6, %v3198_v53  ;;  %v3184_v48 = vsub.f32 %v3096_v28, %v3160_v39  ;;  %v3100_v14 = vmul.f32 %v5762_v26, %v3819_v0  ;;  %v1482_v52 = vpop.f32.mrb[9].mxu0 }
 0x1d1   : > { %v3229_v9 = vadd.f32 %v3213_v56, %v3197_v12  ;;  %v3183_v50 = vsub.f32 %v3094_v33, %v3158_v61  ;;  %v3975_v5 = vpop.f32.mrb[8].mxu1  ;;  %v3098_v60 = vmul.f32 %v5779_v24, %v1482_v52  ;;  %v4352_v24 = vpop.eup %4351  ;;  %v3206_v61 = vld [vmem:[#allocation2 + $0x68] sm:$0xff]  ;;  %v3205_v52 = vld [vmem:[#allocation2 + $0x60] sm:$0xff] }
 0x1d2   : > { %3246 = vst [vmem:[#allocation2 + $0x28] sm:$0xff] %v3230_v54  ;;  %v3216_v19 = vmul.f32 %v3184_v48, %v3184_v48  ;;  %v3164_v59 = vmul.f32 %v5903_v37, %v3975_v5  ;;  %v2622_v4 = vpop.f32.mrb[9].mxu1 }
 0x1d3   : > { %3245 = vst [vmem:[#allocation2 + $0x20] sm:$0xff] %v3229_v9  ;;  %v3215_v35 = vmul.f32 %v3183_v50, %v3183_v50  ;;  %v3162_v26 = vmul.f32 %v4342_v38, %v2622_v4  ;;  %v3822_v31 = vpop.f32.mrb[10].mxu0  ;;  %v4354_v38 = vpop.eup %4353  ;;  %v3207_v4 = vld [vmem:[#allocation2 + $0x70] sm:$0xff] }
 0x1d4   : > { %v3232_v46 = vadd.f32 %v3216_v19, %v3200_v20  ;;  %v3186_v3 = vsub.f32 %v3100_v14, %v3164_v59  ;;  %v3104_v49 = vmul.f32 %v5908_v10, %v3822_v31  ;;  %v1494_v11 = vpop.f32.mrb[11].mxu0  ;;  %v4356_v47 = vpop.eup %4355  ;;  %v3208_v19 = vld [vmem:[#allocation2 + $0x78] sm:$0xff] }
 0x1d5   : > { %v3231_v36 = vadd.f32 %v3215_v35, %v3199_v8  ;;  %v3185_v15 = vsub.f32 %v3098_v60, %v3162_v26  ;;  %v3978_v18 = vpop.f32.mrb[10].mxu1  ;;  %v3102_v62 = vmul.f32 %v4346_v42, %v1494_v11  ;;  %v4358_v58 = vpop.eup %4357 }
 0x1d6   : > { %3248 = vst [vmem:[#allocation2 + $0x38] sm:$0xff] %v3232_v46  ;;  %v3218_v37 = vmul.f32 %v3186_v3, %v3186_v3  ;;  %v3168_v63 = vmul.f32 %v5911_v57, %v3978_v18  ;;  %v2634_v17 = vpop.f32.mrb[11].mxu1  ;;  %v3261_v46 = vld [vmem:[#allocation2] sm:$0xff] (!%p3464_p3)  ;;  %v3262_v3 = vld [vmem:[#allocation2 + $0x8] sm:$0xff] (!%p3464_p3) }
 0x1d7   : > { %3247 = vst [vmem:[#allocation2 + $0x30] sm:$0xff] %v3231_v36  ;;  %v3217_v30 = vmul.f32 %v3185_v15, %v3185_v15  ;;  %v3166_v25 = vmul.f32 %v4348_v16, %v2634_v17  ;;  %v3825_v13 = vpop.f32.mrb[12].mxu0  ;;  %v4360_v16 = vpop.eup %4359  ;;  %v3277_v11 = vadd.f32 (!%p3464_p3), %v3262_v3, %v3261_v46 }
 0x1d8   : > { %v3234_v10 = vadd.f32 %v3218_v37, %v3202_v51  ;;  %v3188_v55 = vsub.f32 %v3104_v49, %v3168_v63  ;;  %v3108_v7 = vmul.f32 %v4350_v1, %v3825_v13  ;;  %v1506_v32 = vpop.f32.mrb[13].mxu0  ;;  %v4362_v43 = vpop.eup %4361  ;;  %v3263_v49 = vld [vmem:[#allocation2 + $0x10] sm:$0xff] (!%p3464_p3) }
 0x1d9   : > { %v3233_v2 = vadd.f32 %v3217_v30, %v3201_v23  ;;  %v3187_v34 = vsub.f32 %v3102_v62, %v3166_v25  ;;  %v3981_v28 = vpop.f32.mrb[12].mxu1  ;;  %v3106_v44 = vmul.f32 %v4354_v38, %v1506_v32  ;;  %v4364_v48 = vpop.eup %4363  ;;  %v3278_v36 = vadd.f32 (!%p3464_p3), %v3277_v11, %v3263_v49  ;;  %v3266_v18 = vld [vmem:[#allocation2 + $0x28] sm:$0xff] (!%p3464_p3) }
 0x1da   : > { %3250 = vst [vmem:[#allocation2 + $0x48] sm:$0xff] %v3234_v10  ;;  %v3220_v42 = vmul.f32 %v3188_v55, %v3188_v55  ;;  %v3172_v57 = vmul.f32 %v4352_v24, %v3981_v28  ;;  %v2646_v53 = vpop.f32.mrb[13].mxu1  ;;  %v3264_v24 = vld [vmem:[#allocation2 + $0x18] sm:$0xff] (!%p3464_p3)  ;;  %v3265_v51 = vld [vmem:[#allocation2 + $0x20] sm:$0xff] (!%p3464_p3) }
 0x1db   : > { %3249 = vst [vmem:[#allocation2 + $0x40] sm:$0xff] %v3233_v2  ;;  %v3219_v29 = vmul.f32 %v3187_v34, %v3187_v34  ;;  %v3170_v33 = vmul.f32 %v4356_v47, %v2646_v53  ;;  %v3828_v27 = vpop.f32.mrb[14].mxu0  ;;  %v3279_v15 = vadd.f32 (!%p3464_p3), %v3278_v36, %v3264_v24 }
 0x1dc   : > { %v3236_v6 = vadd.f32 %v3220_v42, %v3204_v40  ;;  %v3190_v12 = vsub.f32 %v3108_v7, %v3172_v57  ;;  %v3112_v39 = vmul.f32 %v4358_v58, %v3828_v27  ;;  %v1518_v22 = vpop.f32.mrb[15].mxu0 }
 0x1dd   : > { %v3235_v56 = vadd.f32 %v3219_v29, %v3203_v45  ;;  %v3189_v0 = vsub.f32 %v3106_v44, %v3170_v33  ;;  %v3984_v41 = vpop.f32.mrb[14].mxu1  ;;  %v3110_v54 = vmul.f32 %v4360_v16, %v1518_v22  ;;  %v3280_v62 = vadd.f32 (!%p3464_p3), %v3279_v15, %v3265_v51  ;;  %v3268_v63 = vld [vmem:[#allocation2 + $0x38] sm:$0xff] (!%p3464_p3) }
 0x1de   : > { %3252 = vst [vmem:[#allocation2 + $0x58] sm:$0xff] %v3236_v6  ;;  %v3222_v14 = vmul.f32 %v3190_v12, %v3190_v12  ;;  %v3176_v21 = vmul.f32 %v4362_v43, %v3984_v41  ;;  %v2658_v1 = vpop.f32.mrb[15].mxu1  ;;  %v3267_v37 = vld [vmem:[#allocation2 + $0x30] sm:$0xff] (!%p3464_p3) }
 0x1df   : > { %3251 = vst [vmem:[#allocation2 + $0x50] sm:$0xff] %v3235_v56  ;;  %v3221_v9 = vmul.f32 %v3189_v0, %v3189_v0  ;;  %v3174_v20 = vmul.f32 %v4364_v48, %v2658_v1  ;;  %v3281_v23 = vadd.f32 (!%p3464_p3), %v3280_v62, %v3266_v18 }
 0x1e0   : > { %v3238_v50 = vadd.f32 %v3222_v14, %v3206_v61  ;;  %v3192_v5 = vsub.f32 %v3112_v39, %v3176_v21 }
 0x1e1   : > { %v3237_v60 = vadd.f32 %v3221_v9, %v3205_v52  ;;  %v3191_v8 = vsub.f32 %v3110_v54, %v3174_v20  ;;  %3260 = sbr.rel (%p3464_p3) target bundleno = 514 (0x202), region = 44  ;;  %v3282_v17 = vadd.f32 (!%p3464_p3), %v3281_v23, %v3267_v37  ;;  %v3270_v13 = vld [vmem:[#allocation2 + $0x48] sm:$0xff] (!%p3464_p3) }
 0x1e2   : > { %3254 = vst [vmem:[#allocation2 + $0x68] sm:$0xff] %v3238_v50  ;;  %v3224_v59 = vmul.f32 %v3192_v5, %v3192_v5  ;;  %v3269_v30 = vld [vmem:[#allocation2 + $0x40] sm:$0xff] (!%p3464_p3) }
 0x1e3   : > { %3253 = vst [vmem:[#allocation2 + $0x60] sm:$0xff] %v3237_v60  ;;  %v3223_v35 = vmul.f32 %v3191_v8, %v3191_v8  ;;  %v3283_v25 = vadd.f32 (!%p3464_p3), %v3282_v17, %v3268_v63 }
 0x1e4   : > { %v3240_v26 = vadd.f32 %v3224_v59, %v3208_v19 }
 0x1e5   : > { %v3239_v31 = vadd.f32 %v3223_v35, %v3207_v4  ;;  %v3284_v38 = vadd.f32 (!%p3464_p3), %v3283_v25, %v3269_v30  ;;  %v3272_v7 = vld [vmem:[#allocation2 + $0x58] sm:$0xff] (!%p3464_p3) }
 0x1e6   : > { %3256 = vst [vmem:[#allocation2 + $0x78] sm:$0xff] %v3240_v26  ;;  %v3271_v10 = vld [vmem:[#allocation2 + $0x50] sm:$0xff] (!%p3464_p3) }
 0x1e7   : > { %3255 = vst [vmem:[#allocation2 + $0x70] sm:$0xff] %v3239_v31  ;;  %v3285_v55 = vadd.f32 (!%p3464_p3), %v3284_v38, %v3270_v13 }
 0x1e9   : > { %v3286_v32 = vadd.f32 %v3285_v55, %v3271_v10  ;;  %v3274_v40 = vld [vmem:[#allocation2 + $0x68] sm:$0xff] }
 0x1ea   : > { %v3273_v47 = vld [vmem:[#allocation2 + $0x60] sm:$0xff] }
 0x1eb   : > { %v3287_v2 = vadd.f32 %v3286_v32, %v3272_v7 }
 0x1ed   : > { %v3288_v34 = vadd.f32 %v3287_v2, %v3273_v47  ;;  %v3276_v42 = vld [vmem:[#allocation2 + $0x78] sm:$0xff] }
 0x1ee   : > { %v3275_v28 = vld [vmem:[#allocation2 + $0x70] sm:$0xff] }
 0x1ef   : > { %v3289_v44 = vadd.f32 %v3288_v34, %v3274_v40 }
 0x1f1   : > { %v3290_v45 = vadd.f32 %v3289_v44, %v3275_v28 }
 0x1f3   : > { %v3291_v57 = vadd.f32 %v3290_v45, %v3276_v42 }
 0x1f5   : > { %v3292_v53 = vrot.slane %v3291_v57, 4 }
 0x1f7   : > { %v3293_v58 = vadd.f32 %v3292_v53, %v3291_v57 }
 0x1f9   : > { %v3294_v29 = vrot.slane %v3293_v58, 2 }
 0x1fb   : > { %v3295_v33 = vadd.f32 %v3294_v29, %v3293_v58 }
 0x1fd   : > { %v3296_v27 = vrot.slane %v3295_v33, 1 }
 0x1ff   : > { %v3297_v16 = vadd.f32 %v3296_v27, %v3295_v33 }
 0x201   : > { %3298 = vst [vmem:[%s4616_s8] sm:$0x1] %v3297_v16 }
 0x202 PF: > { %s3465_s17 = sshll.u32 %s4460_s20, 1  ;;  %s3314_s21 = sshll.u32 %s4616_s8, 4  ;;  %s5927_s21 = int_to_ptr.vmem [resolvable:$true] %s3314_s21 }
 0x203   : > { %s3310_s18 = sadd.s32 %s4456_s19, %s3465_s17  ;;  %s6296_s29 = sand.u32 1, %s4444_s16  }
 0x204   : > { %s3466_s22 = sshll.u32 %s3310_s18, 4  ;;  %s3300_s10 = scalar_lea.sflag [#allocation4], %s6296_s29 }
 0x205   : > { %s3312_s28 = scalar_lea.hbm %s5988_s4, %s3466_s22  ;;  %s4366_s11 = scalar_lea.vmem %s5927_s21, 16 }
 0x206   : > { %p4367_p4 = scmp.ne.s32.totalorder %s5927_s21, %s4366_s11  ;;  %s4479_s20 = smov [#allocation3]  }
 0x207   : > { %s4370_s19 = sshll.u32 %s4479_s20, 4  ;;  %s4371_s19 = int_to_ptr.vmem [resolvable:$false] %s4370_s19 }
 0x208   : > { %p4368_p5 = pnand %p4367_p4, %p4567_p6  ;;  %s4372_s26 = scalar_lea.vmem %s4371_s19, 32 }
 0x209   : > { %p4373_p9 = scmp.lt.s32.totalorder %s5927_s21, %s4371_s19  ;;  %p4374_p10 = scmp.lt.s32.totalorder %s4372_s26, %s4366_s11 }
 0x20a   : > { %p4369_p8 = pneg %p4368_p5 }
 0x20b   : > { %p4375_p11 = por %p4374_p10, %p4373_p9 }
 0x20d   : > { %p4376_p12 = pnand %p4375_p11, %p4369_p8 }
 0x20f   : > { %4379 = shalt.err (!%p4376_p12)
}
 0x210   : > { %s4380_s6 = scalar_lea.hbm %s3312_s28, 16  ;;  %s4384_s14 = scalar_lea.hbm %s5988_s4, 64 }
 0x211   : > { %p4381_p13 = scmp.ne.s32.totalorder %s3312_s28, %s4380_s6  ;;  %p4385_p2 = scmp.lt.u32.totalorder %s3312_s28, %s5988_s4 }
 0x212   : > { %p4386_p3 = scmp.lt.u32.totalorder %s4384_s14, %s4380_s6  ;;  %p4388_p5 = scmp.lt.u32.totalorder %s4380_s6, %s3312_s28 }
 0x213   : > { %p4382_p0 = pnand %p4381_p13, %p4567_p6 }
 0x214   : > { %p4387_p4 = por %p4386_p3, %p4385_p2 }
 0x215   : > { %p4383_p1 = pneg %p4382_p0 }
 0x216   : > { %p4389_p9 = por %p4388_p5, %p4387_p4 }
 0x218   : > { %p4390_p8 = pnand %p4389_p9, %p4383_p1 }
 0x21a   : > { %4393 = shalt.err (!%p4390_p8)
}
 0x21b   : > { %4145 = dma.vmem_to_hbm [thread:$0]  (%p4567_p6), %s5927_s21, 16, %s3312_s28, %s3300_s10  }
 0x21c PF: > { %p4151_p10 = scmp.ge.s32.totalorder %s4476_s24, 2  ;;  %s3326_s7 = sand.u32 1, %s4440_s15  }
 0x21d   : > { %s3327_s8 = scalar_lea.sflag [#allocation4], %s3326_s7 }
 0x21e   : > { %p4148_p11 = pnand %p4151_p10, %p4574_p7 }
 0x220   : > { %4435 = dma.done.wait (!%p4148_p11), %s3327_s8, 16  }
 0x221   : > { %4437 = vsyncadd (!%p4148_p11), %s3327_s8, 4294967280  ;;  %s17_s24 = sadd.s32 1, %s4476_s24   ;;  %s6297_s17 = sld [smem:[#allocation6_spill]] }
 0x222   : > { %p14_p12 = scmp.ge.s32.totalorder %s17_s24, 10   ;;  %s6298_s18 = sld [smem:[#allocation13_spill]] }
 0x223   : > { %s6299_s30 = sld [smem:[#allocation7_spill]]  ;;  %s6300_s19 = sld [smem:[#allocation8_spill]] }
 0x224   : > { %s6301_s20 = sld [smem:[#allocation9_spill]]  ;;  %s6302_s21 = sld [smem:[#allocation10_spill]] }
 0x225   : > { %s6303_s22 = sld [smem:[#allocation11_spill]]  ;;  %s6304_s23 = sld [smem:[#allocation12_spill]] }
 0x226   : > { %s6305_s15 = smov %s4444_s16  ;;  %16 = sbr.rel (!%p14_p12) target bundleno = 6 (0x6), region = 88 }
 0x227   : > { %s6306_s16 = smov %s6297_s17 }
 0x228   : > { %s6307_s17 = smov %s6298_s18 }
 0x229   : > { %s6308_s18 = smov %s6299_s30 }
 0x22d   :  { %3331 = vsyncpa [#allocation4], 1 }
 0x22e   :  { %3333 = vsyncpa [#allocation4 + $0x1], 1 }

</bundles_post_ra>
